<compile_context>
chip_gen: v7x
topology: tpu7x:2x2x1
jax: 0.10.0
libtpu: 0.0.40
codegen_flags: <defaults>
</compile_context>

<pallas_src>
import jax
import jax.numpy as jnp
from jax import lax
from jax.experimental import pallas as pl
from jax.experimental.pallas import tpu as pltpu


def _round_up(x, m):
    return (x + m - 1) // m * m


# ---------------------------------------------------------------------------
# Fused kernel: input projection -> interleaved fwd/bwd LSTM -> FC -> log_softmax
# ---------------------------------------------------------------------------
def fused_bilstm_fc_kernel(x_ref,      # (W, Np, D)    bf16   time-major, batch padded
                           lens_ref,   # (Np, 1)       int32  sequence lengths
                           wih_ref,    # (D, 8H)       bf16   [W_ih fwd | W_ih bwd]
                           whh_f_ref,  # (H, 4H)       bf16
                           whh_b_ref,  # (H, 4H)       bf16
                           b_ref,      # (1, 8H)       f32    [b fwd | b bwd] (b_ih+b_hh)
                           fcw_f_ref,  # (H, Cp)       bf16   fc rows for fwd features
                           fcw_b_ref,  # (H, Cp)       bf16   fc rows for bwd features
                           fcb_ref,    # (1, Cp)       f32    (-1e30 in padded class lanes)
                           o_ref,      # (W, Np, Cp)   f32    log-probs (lane-dense store)
                           xg_ref,     # (W, Np, 8H)   f32    scratch: projected inputs
                           ff_ref,     # (W, Np, H)    f32    scratch: fwd hidden outputs
                           fb_ref):    # (W, Np, H)    f32    scratch: bwd hidden outputs
    W, Np, D = x_ref.shape
    H = whh_f_ref.shape[0]
    H4 = 4 * H
    Cp = o_ref.shape[2]

    # ---- hoisted input projection: one batched MXU matmul + one bias broadcast ------
    # Result goes to VMEM scratch so only one time-step slice needs to be live in
    # registers inside the recurrent loop.
    x2d = x_ref[...].reshape(W * Np, D)
    xg = jnp.dot(x2d, wih_ref[...], preferred_element_type=jnp.float32) + b_ref[...]
    xg_ref[...] = xg.reshape(W, Np, 2 * H4)
    # xg cols [0:4H] = forward gates' x-part, [4H:8H] = backward.

    lens = lens_ref[...]             # (Np, 1) int32
    whh_f = whh_f_ref[...]           # weight reads hoisted out of the loop
    whh_b = whh_b_ref[...]

    def cell(xg_t, valid, h, c, whh):
        # PyTorch gate order [i, f, g, o]. bf16 dot operands, f32 accumulation/state.
        gates = xg_t + jnp.dot(h.astype(jnp.bfloat16), whh,
                               preferred_element_type=jnp.float32)
        # TODO(synk): for production sizes keep H a multiple of 128 so these gate
        # slices land on (8,128)-aligned lane tiles (here 4H == 128, intra-tile).
        i_g = jax.nn.sigmoid(gates[:, 0:H])
        f_g = jax.nn.sigmoid(gates[:, H:2 * H])
        g_g = jnp.tanh(gates[:, 2 * H:3 * H])
        o_g = jax.nn.sigmoid(gates[:, 3 * H:4 * H])
        c_new = f_g * c + i_g * g_g
        h_new = o_g * jnp.tanh(c_new)
        h_next = jnp.where(valid, h_new, h)      # freeze state past sequence end
        c_next = jnp.where(valid, c_new, c)
        y = jnp.where(valid, h_new, 0.0)         # padded positions emit zeros
        return h_next, c_next, y

    zeros = jnp.zeros((Np, H), jnp.float32)
    hf, cf = zeros, zeros
    hb, cb = zeros, zeros

    # ---- interleaved fwd/bwd recurrence (fully unrolled: W is static & small) -------
    # The two directions are independent; interleaving them gives two parallel
    # dependency chains so MXU / VPU / EUP work of one hides the other's latency.
    # TODO(synk): on v7x the two directions could also be split across the two
    # TensorCores via pl.core_map; kept in one body here for 1-TC portability.
    for s in range(W):
        tf = s
        tb = W - 1 - s
        vf = tf < lens
        vb = tb < lens
        hf, cf, yf = cell(xg_ref[tf, :, 0:H4], vf, hf, cf, whh_f)
        hb, cb, yb = cell(xg_ref[tb, :, H4:2 * H4], vb, hb, cb, whh_b)
        ff_ref[tf] = yf                           # 8-row (sublane-aligned) f32 stores
        fb_ref[tb] = yb

    # ---- fused FC + log_softmax epilogue (fc_w split -> no feature concat needed) ---
    feats_f = ff_ref[...].reshape(W * Np, H).astype(jnp.bfloat16)
    feats_b = fb_ref[...].reshape(W * Np, H).astype(jnp.bfloat16)
    logits = (jnp.dot(feats_f, fcw_f_ref[...], preferred_element_type=jnp.float32)
              + jnp.dot(feats_b, fcw_b_ref[...], preferred_element_type=jnp.float32)
              + fcb_ref[...])                                      # (W*Np, Cp)
    m = jnp.max(logits, axis=-1, keepdims=True)
    shifted = logits - m
    lse = jnp.log(jnp.sum(jnp.exp(shifted), axis=-1, keepdims=True))
    o_ref[...] = (shifted - lse).reshape(W, Np, Cp)


# ---------------------------------------------------------------------------
# Wrapper
# ---------------------------------------------------------------------------
def bidirectional_lstm_forward(seqs, seq_lens, params):
    """seqs: (N, W, D); seq_lens: (N,) ints. Returns (W, N, C) log-probs."""
    N, W, D = seqs.shape
    H = params["whh_f"].shape[0]
    C = params["fc_w"].shape[1]
    Np = _round_up(max(N, 8), 8)          # pad batch to a full sublane group
    Cp = _round_up(max(C, 128), 128)      # pad classes -> lane-dense output store

    # activations: time-major, batch-padded, bf16 MXU operand
    x = jnp.transpose(seqs, (1, 0, 2))
    x = jnp.pad(x, ((0, 0), (0, Np - N), (0, 0))).astype(jnp.bfloat16)
    lens = jnp.pad(seq_lens.astype(jnp.int32), (0, Np - N)).reshape(Np, 1)

    # one-time parameter packing (would be cached in a real model)
    wih = jnp.concatenate([params["wih_f"], params["wih_b"]], axis=1).astype(jnp.bfloat16)
    b = jnp.concatenate([params["b_f"], params["b_b"]], axis=1).astype(jnp.float32)
    whh_f = params["whh_f"].astype(jnp.bfloat16)
    whh_b = params["whh_b"].astype(jnp.bfloat16)
    fcw = params["fc_w"]
    fcw_f = jnp.pad(fcw[:H], ((0, 0), (0, Cp - C))).astype(jnp.bfloat16)
    fcw_b = jnp.pad(fcw[H:], ((0, 0), (0, Cp - C))).astype(jnp.bfloat16)
    fcb = jnp.pad(params["fc_b"].astype(jnp.float32), ((0, 0), (0, Cp - C)),
                  constant_values=-1e30)   # padded classes get ~zero softmax weight

    vmem = pl.BlockSpec(memory_space=pltpu.MemorySpace.VMEM)
    out = pl.pallas_call(
        fused_bilstm_fc_kernel,
        out_shape=jax.ShapeDtypeStruct((W, Np, Cp), jnp.float32),
        in_specs=[vmem] * 9,
        out_specs=vmem,
        scratch_shapes=[
            pltpu.VMEM((W, Np, 8 * H), jnp.float32),   # projected input gates
            pltpu.VMEM((W, Np, H), jnp.float32),       # fwd hidden outputs
            pltpu.VMEM((W, Np, H), jnp.float32),       # bwd hidden outputs
        ],
    )(x, lens, wih, whh_f, whh_b, b, fcw_f, fcw_b, fcb)

    return out[:, :N, :C]                 # (W, N, C) == log_probs.permute(1, 0, 2)


# ---------------------------------------------------------------------------
# Params + pure-JAX reference (for correctness check)
# ---------------------------------------------------------------------------
def init_params(key, input_size, hidden_size, num_classes):
    H, D, C = hidden_size, input_size, num_classes
    ks = jax.random.split(key, 10)
    s = 1.0 / jnp.sqrt(jnp.float32(H))
    u = lambda k, shape: jax.random.uniform(k, shape, jnp.float32, -s, s)
    return {
        # forward-direction LSTM weights (already transposed: x @ W form)
        "wih_f": u(ks[0], (D, 4 * H)),
        "whh_f": u(ks[1], (H, 4 * H)),
        "b_f":   u(ks[2], (1, 4 * H)) + u(ks[3], (1, 4 * H)),  # b_ih + b_hh
        # backward-direction LSTM weights
        "wih_b": u(ks[4], (D, 4 * H)),
        "whh_b": u(ks[5], (H, 4 * H)),
        "b_b":   u(ks[6], (1, 4 * H)) + u(ks[7], (1, 4 * H)),
        # final classifier
        "fc_w": u(ks[8], (2 * H, C)),
        "fc_b": u(ks[9], (1, C)),
    }


def _reference_forward(seqs, seq_lens, params):
    N, W, D = seqs.shape
    H = params["whh_f"].shape[0]
    x = jnp.transpose(seqs, (1, 0, 2)).astype(jnp.float32)                # (W, N, D)
    valid = (jnp.arange(W)[:, None] < seq_lens[None, :]).astype(jnp.float32)  # (W, N)

    def run(wih, whh, bias, reverse):
        def cell(carry, inp):
            h, c = carry
            x_t, m_t = inp
            g = x_t @ wih + h @ whh + bias
            i = jax.nn.sigmoid(g[:, :H]); f = jax.nn.sigmoid(g[:, H:2 * H])
            gg = jnp.tanh(g[:, 2 * H:3 * H]); o = jax.nn.sigmoid(g[:, 3 * H:])
            c_new = f * c + i * gg
            h_new = o * jnp.tanh(c_new)
            m = m_t[:, None]
            return (m * h_new + (1 - m) * h, m * c_new + (1 - m) * c), h_new * m
        h0 = jnp.zeros((N, H), jnp.float32)
        xs = (x[::-1], valid[::-1]) if reverse else (x, valid)
        _, ys = lax.scan(cell, (h0, h0), xs)
        return ys[::-1] if reverse else ys

    out_f = run(params["wih_f"], params["whh_f"], params["b_f"], False)
    out_b = run(params["wih_b"], params["whh_b"], params["b_b"], True)
    feats = jnp.concatenate([out_f, out_b], axis=-1)                      # (W, N, 2H)
    logits = feats @ params["fc_w"] + params["fc_b"]
    return jax.nn.log_softmax(logits, axis=-1)                            # (W, N, C)


if __name__ == "__main__":
    # Small shapes consistent with the module's forward: seqs (N, W, input_size)
    N, W, D, H, C = 2, 8, 32, 32, 16

    key = jax.random.PRNGKey(0)
    k_x, k_p = jax.random.split(key)
    seqs = jax.random.normal(k_x, (N, W, D), jnp.float32)
    seq_lens = jnp.array([8, 5], dtype=jnp.int32)   # widths before padding
    params = init_params(k_p, D, H, C)

    log_probs = bidirectional_lstm_forward(seqs, seq_lens, params)
    log_probs = jax.block_until_ready(log_probs)

    assert log_probs.shape == (W, N, C)
    assert bool(jnp.all(jnp.isfinite(log_probs)))

    ref = _reference_forward(seqs, seq_lens, params)
    max_err = float(jnp.max(jnp.abs(log_probs - ref)))
    assert max_err < 0.2, f"max abs error vs f32 reference too large: {max_err}"

    print("KERNEL_OK")
</pallas_src>

<mosaic_0001>
module attributes {stable_mosaic.version = 11 : i64} {
  func.func @fused_bilstm_fc_kernel(%arg0: memref<8x8x32xbf16, #tpu.memory_space<vmem>>, %arg1: memref<8x1xi32, #tpu.memory_space<vmem>>, %arg2: memref<32x256xbf16, #tpu.memory_space<vmem>>, %arg3: memref<32x128xbf16, #tpu.memory_space<vmem>>, %arg4: memref<32x128xbf16, #tpu.memory_space<vmem>>, %arg5: memref<1x256xf32, #tpu.memory_space<vmem>>, %arg6: memref<32x128xbf16, #tpu.memory_space<vmem>>, %arg7: memref<32x128xbf16, #tpu.memory_space<vmem>>, %arg8: memref<1x128xf32, #tpu.memory_space<vmem>>, %arg9: memref<8x8x128xf32, #tpu.memory_space<vmem>>, %arg10: memref<8x8x256xf32, #tpu.memory_space<vmem>>, %arg11: memref<8x8x32xf32, #tpu.memory_space<vmem>>, %arg12: memref<8x8x32xf32, #tpu.memory_space<vmem>>) attributes {dimension_semantics = [], scalar_prefetch = 0 : i64, scratch_operands = 3 : i64, tpu.core_type = #tpu.core_type<tc>} {
    %c0 = arith.constant 0 : index
    %c0_0 = arith.constant 0 : index
    %c0_1 = arith.constant 0 : index
    %0 = vector.load %arg0[%c0, %c0_0, %c0_1] : memref<8x8x32xbf16, #tpu.memory_space<vmem>>, vector<8x8x32xbf16>
    %1 = vector.shape_cast %0 : vector<8x8x32xbf16> to vector<64x32xbf16>
    %c0_2 = arith.constant 0 : index
    %c0_3 = arith.constant 0 : index
    %2 = vector.load %arg2[%c0_2, %c0_3] : memref<32x256xbf16, #tpu.memory_space<vmem>>, vector<32x256xbf16>
    %cst = arith.constant dense<0.000000e+00> : vector<64x256xf32>
    %3 = tpu.matmul %1, %2, %cst {dimension_numbers = #tpu.dot_dimension_numbers<[1], [0], [0], [1], [0, 0, 1, 1], [], []>} : vector<64x32xbf16>, vector<32x256xbf16>, vector<64x256xf32> -> vector<64x256xf32>
    %c0_4 = arith.constant 0 : index
    %c0_5 = arith.constant 0 : index
    %4 = vector.load %arg5[%c0_4, %c0_5] : memref<1x256xf32, #tpu.memory_space<vmem>>, vector<1x256xf32>
    %5 = vector.broadcast %4 : vector<1x256xf32> to vector<64x256xf32>
    %6 = arith.addf %3, %5 : vector<64x256xf32>
    %7 = vector.shape_cast %6 : vector<64x256xf32> to vector<8x8x256xf32>
    %c0_6 = arith.constant 0 : index
    %c0_7 = arith.constant 0 : index
    %c0_8 = arith.constant 0 : index
    %8 = vector.load %arg10[%c0_6, %c0_7, %c0_8] : memref<8x8x256xf32, #tpu.memory_space<vmem>>, vector<8x8x256xf32>
    tpu.vector_store %arg10[%c0_6, %c0_7, %c0_8], %7 {strides = array<i32>} : memref<8x8x256xf32, #tpu.memory_space<vmem>>, vector<8x8x256xf32>,
    %c0_9 = arith.constant 0 : index
    %c0_10 = arith.constant 0 : index
    %9 = vector.load %arg1[%c0_9, %c0_10] : memref<8x1xi32, #tpu.memory_space<vmem>>, vector<8x1xi32>
    %c0_11 = arith.constant 0 : index
    %c0_12 = arith.constant 0 : index
    %10 = vector.load %arg3[%c0_11, %c0_12] : memref<32x128xbf16, #tpu.memory_space<vmem>>, vector<32x128xbf16>
    %c0_13 = arith.constant 0 : index
    %c0_14 = arith.constant 0 : index
    %11 = vector.load %arg4[%c0_13, %c0_14] : memref<32x128xbf16, #tpu.memory_space<vmem>>, vector<32x128xbf16>
    %cst_15 = arith.constant 0.000000e+00 : f32
    %12 = vector.broadcast %cst_15 : f32 to vector<8x32xf32>
    %c0_i32 = arith.constant 0 : i32
    %13 = vector.broadcast %c0_i32 : i32 to vector<8x1xi32>
    %14 = arith.cmpi sgt, %9, %13 : vector<8x1xi32>
    %c7_i32 = arith.constant 7 : i32
    %15 = vector.broadcast %c7_i32 : i32 to vector<8x1xi32>
    %16 = arith.cmpi sgt, %9, %15 : vector<8x1xi32>
    %c0_16 = arith.constant 0 : index
    %c0_17 = arith.constant 0 : index
    %c0_18 = arith.constant 0 : index
    %17 = vector.load %arg10[%c0_16, %c0_17, %c0_18] : memref<8x8x256xf32, #tpu.memory_space<vmem>>, vector<1x8x128xf32>
    %18 = vector.shape_cast %17 : vector<1x8x128xf32> to vector<8x128xf32>
    %19 = arith.truncf %12 : vector<8x32xf32> to vector<8x32xbf16>
    %cst_19 = arith.constant dense<0.000000e+00> : vector<8x128xf32>
    %20 = tpu.matmul %19, %10, %cst_19 {dimension_numbers = #tpu.dot_dimension_numbers<[1], [0], [0], [1], [0, 0, 1, 1], [], []>} : vector<8x32xbf16>, vector<32x128xbf16>, vector<8x128xf32> -> vector<8x128xf32>
    %21 = arith.addf %18, %20 : vector<8x128xf32>
    %22 = vector.extract_strided_slice %21 {offsets = [0, 0], sizes = [8, 32], strides = [1, 1]} : vector<8x128xf32> to vector<8x32xf32>
    %23 = arith.negf %22 : vector<8x32xf32>
    %24 = math.exp %23 : vector<8x32xf32>
    %cst_20 = arith.constant 1.000000e+00 : f32
    %25 = vector.broadcast %cst_20 : f32 to vector<8x32xf32>
    %26 = arith.addf %25, %24 : vector<8x32xf32>
    %27 = arith.divf %25, %26 : vector<8x32xf32>
    %28 = vector.extract_strided_slice %21 {offsets = [0, 32], sizes = [8, 32], strides = [1, 1]} : vector<8x128xf32> to vector<8x32xf32>
    %29 = arith.negf %28 : vector<8x32xf32>
    %30 = math.exp %29 : vector<8x32xf32>
    %cst_21 = arith.constant 1.000000e+00 : f32
    %31 = vector.broadcast %cst_21 : f32 to vector<8x32xf32>
    %32 = arith.addf %31, %30 : vector<8x32xf32>
    %33 = arith.divf %31, %32 : vector<8x32xf32>
    %34 = vector.extract_strided_slice %21 {offsets = [0, 64], sizes = [8, 32], strides = [1, 1]} : vector<8x128xf32> to vector<8x32xf32>
    %35 = math.tanh %34 : vector<8x32xf32>
    %36 = vector.extract_strided_slice %21 {offsets = [0, 96], sizes = [8, 32], strides = [1, 1]} : vector<8x128xf32> to vector<8x32xf32>
    %37 = arith.negf %36 : vector<8x32xf32>
    %38 = math.exp %37 : vector<8x32xf32>
    %cst_22 = arith.constant 1.000000e+00 : f32
    %39 = vector.broadcast %cst_22 : f32 to vector<8x32xf32>
    %40 = arith.addf %39, %38 : vector<8x32xf32>
    %41 = arith.divf %39, %40 : vector<8x32xf32>
    %42 = arith.mulf %33, %12 : vector<8x32xf32>
    %43 = arith.mulf %27, %35 : vector<8x32xf32>
    %44 = arith.addf %42, %43 : vector<8x32xf32>
    %45 = math.tanh %44 : vector<8x32xf32>
    %46 = arith.mulf %41, %45 : vector<8x32xf32>
    %47 = vector.shape_cast %14 : vector<8x1xi1> to vector<8x1xi1>
    %48 = vector.broadcast %47 : vector<8x1xi1> to vector<8x32xi1>
    %49 = arith.select %48, %46, %12 : vector<8x32xi1>, vector<8x32xf32>
    %50 = vector.shape_cast %14 : vector<8x1xi1> to vector<8x1xi1>
    %51 = vector.broadcast %50 : vector<8x1xi1> to vector<8x32xi1>
    %52 = arith.select %51, %44, %12 : vector<8x32xi1>, vector<8x32xf32>
    %cst_23 = arith.constant 0.000000e+00 : f32
    %53 = vector.shape_cast %14 : vector<8x1xi1> to vector<8x1xi1>
    %54 = vector.broadcast %53 : vector<8x1xi1> to vector<8x32xi1>
    %55 = vector.broadcast %cst_23 : f32 to vector<8x32xf32>
    %56 = arith.select %54, %46, %55 : vector<8x32xi1>, vector<8x32xf32>
    %c7 = arith.constant 7 : index
    %c0_24 = arith.constant 0 : index
    %c128 = arith.constant 128 : index
    %57 = vector.load %arg10[%c7, %c0_24, %c128] : memref<8x8x256xf32, #tpu.memory_space<vmem>>, vector<1x8x128xf32>
    %58 = vector.shape_cast %57 : vector<1x8x128xf32> to vector<8x128xf32>
    %59 = arith.truncf %12 : vector<8x32xf32> to vector<8x32xbf16>
    %cst_25 = arith.constant dense<0.000000e+00> : vector<8x128xf32>
    %60 = tpu.matmul %59, %11, %cst_25 {dimension_numbers = #tpu.dot_dimension_numbers<[1], [0], [0], [1], [0, 0, 1, 1], [], []>} : vector<8x32xbf16>, vector<32x128xbf16>, vector<8x128xf32> -> vector<8x128xf32>
    %61 = arith.addf %58, %60 : vector<8x128xf32>
    %62 = vector.extract_strided_slice %61 {offsets = [0, 0], sizes = [8, 32], strides = [1, 1]} : vector<8x128xf32> to vector<8x32xf32>
    %63 = arith.negf %62 : vector<8x32xf32>
    %64 = math.exp %63 : vector<8x32xf32>
    %cst_26 = arith.constant 1.000000e+00 : f32
    %65 = vector.broadcast %cst_26 : f32 to vector<8x32xf32>
    %66 = arith.addf %65, %64 : vector<8x32xf32>
    %67 = arith.divf %65, %66 : vector<8x32xf32>
    %68 = vector.extract_strided_slice %61 {offsets = [0, 32], sizes = [8, 32], strides = [1, 1]} : vector<8x128xf32> to vector<8x32xf32>
    %69 = arith.negf %68 : vector<8x32xf32>
    %70 = math.exp %69 : vector<8x32xf32>
    %cst_27 = arith.constant 1.000000e+00 : f32
    %71 = vector.broadcast %cst_27 : f32 to vector<8x32xf32>
    %72 = arith.addf %71, %70 : vector<8x32xf32>
    %73 = arith.divf %71, %72 : vector<8x32xf32>
    %74 = vector.extract_strided_slice %61 {offsets = [0, 64], sizes = [8, 32], strides = [1, 1]} : vector<8x128xf32> to vector<8x32xf32>
    %75 = math.tanh %74 : vector<8x32xf32>
    %76 = vector.extract_strided_slice %61 {offsets = [0, 96], sizes = [8, 32], strides = [1, 1]} : vector<8x128xf32> to vector<8x32xf32>
    %77 = arith.negf %76 : vector<8x32xf32>
    %78 = math.exp %77 : vector<8x32xf32>
    %cst_28 = arith.constant 1.000000e+00 : f32
    %79 = vector.broadcast %cst_28 : f32 to vector<8x32xf32>
    %80 = arith.addf %79, %78 : vector<8x32xf32>
    %81 = arith.divf %79, %80 : vector<8x32xf32>
    %82 = arith.mulf %73, %12 : vector<8x32xf32>
    %83 = arith.mulf %67, %75 : vector<8x32xf32>
    %84 = arith.addf %82, %83 : vector<8x32xf32>
    %85 = math.tanh %84 : vector<8x32xf32>
    %86 = arith.mulf %81, %85 : vector<8x32xf32>
    %87 = vector.shape_cast %16 : vector<8x1xi1> to vector<8x1xi1>
    %88 = vector.broadcast %87 : vector<8x1xi1> to vector<8x32xi1>
    %89 = arith.select %88, %86, %12 : vector<8x32xi1>, vector<8x32xf32>
    %90 = vector.shape_cast %16 : vector<8x1xi1> to vector<8x1xi1>
    %91 = vector.broadcast %90 : vector<8x1xi1> to vector<8x32xi1>
    %92 = arith.select %91, %84, %12 : vector<8x32xi1>, vector<8x32xf32>
    %cst_29 = arith.constant 0.000000e+00 : f32
    %93 = vector.shape_cast %16 : vector<8x1xi1> to vector<8x1xi1>
    %94 = vector.broadcast %93 : vector<8x1xi1> to vector<8x32xi1>
    %95 = vector.broadcast %cst_29 : f32 to vector<8x32xf32>
    %96 = arith.select %94, %86, %95 : vector<8x32xi1>, vector<8x32xf32>
    %c0_30 = arith.constant 0 : index
    %c0_31 = arith.constant 0 : index
    %c0_32 = arith.constant 0 : index
    %97 = vector.load %arg11[%c0_30, %c0_31, %c0_32] : memref<8x8x32xf32, #tpu.memory_space<vmem>>, vector<1x8x32xf32>
    %98 = vector.shape_cast %97 : vector<1x8x32xf32> to vector<8x32xf32>
    %99 = vector.shape_cast %56 : vector<8x32xf32> to vector<1x8x32xf32>
    tpu.vector_store %arg11[%c0_30, %c0_31, %c0_32], %99 {strides = array<i32>} : memref<8x8x32xf32, #tpu.memory_space<vmem>>, vector<1x8x32xf32>,
    %c7_33 = arith.constant 7 : index
    %c0_34 = arith.constant 0 : index
    %c0_35 = arith.constant 0 : index
    %100 = vector.load %arg12[%c7_33, %c0_34, %c0_35] : memref<8x8x32xf32, #tpu.memory_space<vmem>>, vector<1x8x32xf32>
    %101 = vector.shape_cast %100 : vector<1x8x32xf32> to vector<8x32xf32>
    %102 = vector.shape_cast %96 : vector<8x32xf32> to vector<1x8x32xf32>
    tpu.vector_store %arg12[%c7_33, %c0_34, %c0_35], %102 {strides = array<i32>} : memref<8x8x32xf32, #tpu.memory_space<vmem>>, vector<1x8x32xf32>,
    %c1_i32 = arith.constant 1 : i32
    %103 = vector.broadcast %c1_i32 : i32 to vector<8x1xi32>
    %104 = arith.cmpi sgt, %9, %103 : vector<8x1xi32>
    %c6_i32 = arith.constant 6 : i32
    %105 = vector.broadcast %c6_i32 : i32 to vector<8x1xi32>
    %106 = arith.cmpi sgt, %9, %105 : vector<8x1xi32>
    %c1 = arith.constant 1 : index
    %c0_36 = arith.constant 0 : index
    %c0_37 = arith.constant 0 : index
    %107 = vector.load %arg10[%c1, %c0_36, %c0_37] : memref<8x8x256xf32, #tpu.memory_space<vmem>>, vector<1x8x128xf32>
    %108 = vector.shape_cast %107 : vector<1x8x128xf32> to vector<8x128xf32>
    %109 = arith.truncf %49 : vector<8x32xf32> to vector<8x32xbf16>
    %cst_38 = arith.constant dense<0.000000e+00> : vector<8x128xf32>
    %110 = tpu.matmul %109, %10, %cst_38 {dimension_numbers = #tpu.dot_dimension_numbers<[1], [0], [0], [1], [0, 0, 1, 1], [], []>} : vector<8x32xbf16>, vector<32x128xbf16>, vector<8x128xf32> -> vector<8x128xf32>
    %111 = arith.addf %108, %110 : vector<8x128xf32>
    %112 = vector.extract_strided_slice %111 {offsets = [0, 0], sizes = [8, 32], strides = [1, 1]} : vector<8x128xf32> to vector<8x32xf32>
    %113 = arith.negf %112 : vector<8x32xf32>
    %114 = math.exp %113 : vector<8x32xf32>
    %cst_39 = arith.constant 1.000000e+00 : f32
    %115 = vector.broadcast %cst_39 : f32 to vector<8x32xf32>
    %116 = arith.addf %115, %114 : vector<8x32xf32>
    %117 = arith.divf %115, %116 : vector<8x32xf32>
    %118 = vector.extract_strided_slice %111 {offsets = [0, 32], sizes = [8, 32], strides = [1, 1]} : vector<8x128xf32> to vector<8x32xf32>
    %119 = arith.negf %118 : vector<8x32xf32>
    %120 = math.exp %119 : vector<8x32xf32>
    %cst_40 = arith.constant 1.000000e+00 : f32
    %121 = vector.broadcast %cst_40 : f32 to vector<8x32xf32>
    %122 = arith.addf %121, %120 : vector<8x32xf32>
    %123 = arith.divf %121, %122 : vector<8x32xf32>
    %124 = vector.extract_strided_slice %111 {offsets = [0, 64], sizes = [8, 32], strides = [1, 1]} : vector<8x128xf32> to vector<8x32xf32>
    %125 = math.tanh %124 : vector<8x32xf32>
    %126 = vector.extract_strided_slice %111 {offsets = [0, 96], sizes = [8, 32], strides = [1, 1]} : vector<8x128xf32> to vector<8x32xf32>
    %127 = arith.negf %126 : vector<8x32xf32>
    %128 = math.exp %127 : vector<8x32xf32>
    %cst_41 = arith.constant 1.000000e+00 : f32
    %129 = vector.broadcast %cst_41 : f32 to vector<8x32xf32>
    %130 = arith.addf %129, %128 : vector<8x32xf32>
    %131 = arith.divf %129, %130 : vector<8x32xf32>
    %132 = arith.mulf %123, %52 : vector<8x32xf32>
    %133 = arith.mulf %117, %125 : vector<8x32xf32>
    %134 = arith.addf %132, %133 : vector<8x32xf32>
    %135 = math.tanh %134 : vector<8x32xf32>
    %136 = arith.mulf %131, %135 : vector<8x32xf32>
    %137 = vector.shape_cast %104 : vector<8x1xi1> to vector<8x1xi1>
    %138 = vector.broadcast %137 : vector<8x1xi1> to vector<8x32xi1>
    %139 = arith.select %138, %136, %49 : vector<8x32xi1>, vector<8x32xf32>
    %140 = vector.shape_cast %104 : vector<8x1xi1> to vector<8x1xi1>
    %141 = vector.broadcast %140 : vector<8x1xi1> to vector<8x32xi1>
    %142 = arith.select %141, %134, %52 : vector<8x32xi1>, vector<8x32xf32>
    %cst_42 = arith.constant 0.000000e+00 : f32
    %143 = vector.shape_cast %104 : vector<8x1xi1> to vector<8x1xi1>
    %144 = vector.broadcast %143 : vector<8x1xi1> to vector<8x32xi1>
    %145 = vector.broadcast %cst_42 : f32 to vector<8x32xf32>
    %146 = arith.select %144, %136, %145 : vector<8x32xi1>, vector<8x32xf32>
    %c6 = arith.constant 6 : index
    %c0_43 = arith.constant 0 : index
    %c128_44 = arith.constant 128 : index
    %147 = vector.load %arg10[%c6, %c0_43, %c128_44] : memref<8x8x256xf32, #tpu.memory_space<vmem>>, vector<1x8x128xf32>
    %148 = vector.shape_cast %147 : vector<1x8x128xf32> to vector<8x128xf32>
    %149 = arith.truncf %89 : vector<8x32xf32> to vector<8x32xbf16>
    %cst_45 = arith.constant dense<0.000000e+00> : vector<8x128xf32>
    %150 = tpu.matmul %149, %11, %cst_45 {dimension_numbers = #tpu.dot_dimension_numbers<[1], [0], [0], [1], [0, 0, 1, 1], [], []>} : vector<8x32xbf16>, vector<32x128xbf16>, vector<8x128xf32> -> vector<8x128xf32>
    %151 = arith.addf %148, %150 : vector<8x128xf32>
    %152 = vector.extract_strided_slice %151 {offsets = [0, 0], sizes = [8, 32], strides = [1, 1]} : vector<8x128xf32> to vector<8x32xf32>
    %153 = arith.negf %152 : vector<8x32xf32>
    %154 = math.exp %153 : vector<8x32xf32>
    %cst_46 = arith.constant 1.000000e+00 : f32
    %155 = vector.broadcast %cst_46 : f32 to vector<8x32xf32>
    %156 = arith.addf %155, %154 : vector<8x32xf32>
    %157 = arith.divf %155, %156 : vector<8x32xf32>
    %158 = vector.extract_strided_slice %151 {offsets = [0, 32], sizes = [8, 32], strides = [1, 1]} : vector<8x128xf32> to vector<8x32xf32>
    %159 = arith.negf %158 : vector<8x32xf32>
    %160 = math.exp %159 : vector<8x32xf32>
    %cst_47 = arith.constant 1.000000e+00 : f32
    %161 = vector.broadcast %cst_47 : f32 to vector<8x32xf32>
    %162 = arith.addf %161, %160 : vector<8x32xf32>
    %163 = arith.divf %161, %162 : vector<8x32xf32>
    %164 = vector.extract_strided_slice %151 {offsets = [0, 64], sizes = [8, 32], strides = [1, 1]} : vector<8x128xf32> to vector<8x32xf32>
    %165 = math.tanh %164 : vector<8x32xf32>
    %166 = vector.extract_strided_slice %151 {offsets = [0, 96], sizes = [8, 32], strides = [1, 1]} : vector<8x128xf32> to vector<8x32xf32>
    %167 = arith.negf %166 : vector<8x32xf32>
    %168 = math.exp %167 : vector<8x32xf32>
    %cst_48 = arith.constant 1.000000e+00 : f32
    %169 = vector.broadcast %cst_48 : f32 to vector<8x32xf32>
    %170 = arith.addf %169, %168 : vector<8x32xf32>
    %171 = arith.divf %169, %170 : vector<8x32xf32>
    %172 = arith.mulf %163, %92 : vector<8x32xf32>
    %173 = arith.mulf %157, %165 : vector<8x32xf32>
    %174 = arith.addf %172, %173 : vector<8x32xf32>
    %175 = math.tanh %174 : vector<8x32xf32>
    %176 = arith.mulf %171, %175 : vector<8x32xf32>
    %177 = vector.shape_cast %106 : vector<8x1xi1> to vector<8x1xi1>
    %178 = vector.broadcast %177 : vector<8x1xi1> to vector<8x32xi1>
    %179 = arith.select %178, %176, %89 : vector<8x32xi1>, vector<8x32xf32>
    %180 = vector.shape_cast %106 : vector<8x1xi1> to vector<8x1xi1>
    %181 = vector.broadcast %180 : vector<8x1xi1> to vector<8x32xi1>
    %182 = arith.select %181, %174, %92 : vector<8x32xi1>, vector<8x32xf32>
    %cst_49 = arith.constant 0.000000e+00 : f32
    %183 = vector.shape_cast %106 : vector<8x1xi1> to vector<8x1xi1>
    %184 = vector.broadcast %183 : vector<8x1xi1> to vector<8x32xi1>
    %185 = vector.broadcast %cst_49 : f32 to vector<8x32xf32>
    %186 = arith.select %184, %176, %185 : vector<8x32xi1>, vector<8x32xf32>
    %c1_50 = arith.constant 1 : index
    %c0_51 = arith.constant 0 : index
    %c0_52 = arith.constant 0 : index
    %187 = vector.load %arg11[%c1_50, %c0_51, %c0_52] : memref<8x8x32xf32, #tpu.memory_space<vmem>>, vector<1x8x32xf32>
    %188 = vector.shape_cast %187 : vector<1x8x32xf32> to vector<8x32xf32>
    %189 = vector.shape_cast %146 : vector<8x32xf32> to vector<1x8x32xf32>
    tpu.vector_store %arg11[%c1_50, %c0_51, %c0_52], %189 {strides = array<i32>} : memref<8x8x32xf32, #tpu.memory_space<vmem>>, vector<1x8x32xf32>,
    %c6_53 = arith.constant 6 : index
    %c0_54 = arith.constant 0 : index
    %c0_55 = arith.constant 0 : index
    %190 = vector.load %arg12[%c6_53, %c0_54, %c0_55] : memref<8x8x32xf32, #tpu.memory_space<vmem>>, vector<1x8x32xf32>
    %191 = vector.shape_cast %190 : vector<1x8x32xf32> to vector<8x32xf32>
    %192 = vector.shape_cast %186 : vector<8x32xf32> to vector<1x8x32xf32>
    tpu.vector_store %arg12[%c6_53, %c0_54, %c0_55], %192 {strides = array<i32>} : memref<8x8x32xf32, #tpu.memory_space<vmem>>, vector<1x8x32xf32>,
    %c2_i32 = arith.constant 2 : i32
    %193 = vector.broadcast %c2_i32 : i32 to vector<8x1xi32>
    %194 = arith.cmpi sgt, %9, %193 : vector<8x1xi32>
    %c5_i32 = arith.constant 5 : i32
    %195 = vector.broadcast %c5_i32 : i32 to vector<8x1xi32>
    %196 = arith.cmpi sgt, %9, %195 : vector<8x1xi32>
    %c2 = arith.constant 2 : index
    %c0_56 = arith.constant 0 : index
    %c0_57 = arith.constant 0 : index
    %197 = vector.load %arg10[%c2, %c0_56, %c0_57] : memref<8x8x256xf32, #tpu.memory_space<vmem>>, vector<1x8x128xf32>
    %198 = vector.shape_cast %197 : vector<1x8x128xf32> to vector<8x128xf32>
    %199 = arith.truncf %139 : vector<8x32xf32> to vector<8x32xbf16>
    %cst_58 = arith.constant dense<0.000000e+00> : vector<8x128xf32>
    %200 = tpu.matmul %199, %10, %cst_58 {dimension_numbers = #tpu.dot_dimension_numbers<[1], [0], [0], [1], [0, 0, 1, 1], [], []>} : vector<8x32xbf16>, vector<32x128xbf16>, vector<8x128xf32> -> vector<8x128xf32>
    %201 = arith.addf %198, %200 : vector<8x128xf32>
    %202 = vector.extract_strided_slice %201 {offsets = [0, 0], sizes = [8, 32], strides = [1, 1]} : vector<8x128xf32> to vector<8x32xf32>
    %203 = arith.negf %202 : vector<8x32xf32>
    %204 = math.exp %203 : vector<8x32xf32>
    %cst_59 = arith.constant 1.000000e+00 : f32
    %205 = vector.broadcast %cst_59 : f32 to vector<8x32xf32>
    %206 = arith.addf %205, %204 : vector<8x32xf32>
    %207 = arith.divf %205, %206 : vector<8x32xf32>
    %208 = vector.extract_strided_slice %201 {offsets = [0, 32], sizes = [8, 32], strides = [1, 1]} : vector<8x128xf32> to vector<8x32xf32>
    %209 = arith.negf %208 : vector<8x32xf32>
    %210 = math.exp %209 : vector<8x32xf32>
    %cst_60 = arith.constant 1.000000e+00 : f32
    %211 = vector.broadcast %cst_60 : f32 to vector<8x32xf32>
    %212 = arith.addf %211, %210 : vector<8x32xf32>
    %213 = arith.divf %211, %212 : vector<8x32xf32>
    %214 = vector.extract_strided_slice %201 {offsets = [0, 64], sizes = [8, 32], strides = [1, 1]} : vector<8x128xf32> to vector<8x32xf32>
    %215 = math.tanh %214 : vector<8x32xf32>
    %216 = vector.extract_strided_slice %201 {offsets = [0, 96], sizes = [8, 32], strides = [1, 1]} : vector<8x128xf32> to vector<8x32xf32>
    %217 = arith.negf %216 : vector<8x32xf32>
    %218 = math.exp %217 : vector<8x32xf32>
    %cst_61 = arith.constant 1.000000e+00 : f32
    %219 = vector.broadcast %cst_61 : f32 to vector<8x32xf32>
    %220 = arith.addf %219, %218 : vector<8x32xf32>
    %221 = arith.divf %219, %220 : vector<8x32xf32>
    %222 = arith.mulf %213, %142 : vector<8x32xf32>
    %223 = arith.mulf %207, %215 : vector<8x32xf32>
    %224 = arith.addf %222, %223 : vector<8x32xf32>
    %225 = math.tanh %224 : vector<8x32xf32>
    %226 = arith.mulf %221, %225 : vector<8x32xf32>
    %227 = vector.shape_cast %194 : vector<8x1xi1> to vector<8x1xi1>
    %228 = vector.broadcast %227 : vector<8x1xi1> to vector<8x32xi1>
    %229 = arith.select %228, %226, %139 : vector<8x32xi1>, vector<8x32xf32>
    %230 = vector.shape_cast %194 : vector<8x1xi1> to vector<8x1xi1>
    %231 = vector.broadcast %230 : vector<8x1xi1> to vector<8x32xi1>
    %232 = arith.select %231, %224, %142 : vector<8x32xi1>, vector<8x32xf32>
    %cst_62 = arith.constant 0.000000e+00 : f32
    %233 = vector.shape_cast %194 : vector<8x1xi1> to vector<8x1xi1>
    %234 = vector.broadcast %233 : vector<8x1xi1> to vector<8x32xi1>
    %235 = vector.broadcast %cst_62 : f32 to vector<8x32xf32>
    %236 = arith.select %234, %226, %235 : vector<8x32xi1>, vector<8x32xf32>
    %c5 = arith.constant 5 : index
    %c0_63 = arith.constant 0 : index
    %c128_64 = arith.constant 128 : index
    %237 = vector.load %arg10[%c5, %c0_63, %c128_64] : memref<8x8x256xf32, #tpu.memory_space<vmem>>, vector<1x8x128xf32>
    %238 = vector.shape_cast %237 : vector<1x8x128xf32> to vector<8x128xf32>
    %239 = arith.truncf %179 : vector<8x32xf32> to vector<8x32xbf16>
    %cst_65 = arith.constant dense<0.000000e+00> : vector<8x128xf32>
    %240 = tpu.matmul %239, %11, %cst_65 {dimension_numbers = #tpu.dot_dimension_numbers<[1], [0], [0], [1], [0, 0, 1, 1], [], []>} : vector<8x32xbf16>, vector<32x128xbf16>, vector<8x128xf32> -> vector<8x128xf32>
    %241 = arith.addf %238, %240 : vector<8x128xf32>
    %242 = vector.extract_strided_slice %241 {offsets = [0, 0], sizes = [8, 32], strides = [1, 1]} : vector<8x128xf32> to vector<8x32xf32>
    %243 = arith.negf %242 : vector<8x32xf32>
    %244 = math.exp %243 : vector<8x32xf32>
    %cst_66 = arith.constant 1.000000e+00 : f32
    %245 = vector.broadcast %cst_66 : f32 to vector<8x32xf32>
    %246 = arith.addf %245, %244 : vector<8x32xf32>
    %247 = arith.divf %245, %246 : vector<8x32xf32>
    %248 = vector.extract_strided_slice %241 {offsets = [0, 32], sizes = [8, 32], strides = [1, 1]} : vector<8x128xf32> to vector<8x32xf32>
    %249 = arith.negf %248 : vector<8x32xf32>
    %250 = math.exp %249 : vector<8x32xf32>
    %cst_67 = arith.constant 1.000000e+00 : f32
    %251 = vector.broadcast %cst_67 : f32 to vector<8x32xf32>
    %252 = arith.addf %251, %250 : vector<8x32xf32>
    %253 = arith.divf %251, %252 : vector<8x32xf32>
    %254 = vector.extract_strided_slice %241 {offsets = [0, 64], sizes = [8, 32], strides = [1, 1]} : vector<8x128xf32> to vector<8x32xf32>
    %255 = math.tanh %254 : vector<8x32xf32>
    %256 = vector.extract_strided_slice %241 {offsets = [0, 96], sizes = [8, 32], strides = [1, 1]} : vector<8x128xf32> to vector<8x32xf32>
    %257 = arith.negf %256 : vector<8x32xf32>
    %258 = math.exp %257 : vector<8x32xf32>
    %cst_68 = arith.constant 1.000000e+00 : f32
    %259 = vector.broadcast %cst_68 : f32 to vector<8x32xf32>
    %260 = arith.addf %259, %258 : vector<8x32xf32>
    %261 = arith.divf %259, %260 : vector<8x32xf32>
    %262 = arith.mulf %253, %182 : vector<8x32xf32>
    %263 = arith.mulf %247, %255 : vector<8x32xf32>
    %264 = arith.addf %262, %263 : vector<8x32xf32>
    %265 = math.tanh %264 : vector<8x32xf32>
    %266 = arith.mulf %261, %265 : vector<8x32xf32>
    %267 = vector.shape_cast %196 : vector<8x1xi1> to vector<8x1xi1>
    %268 = vector.broadcast %267 : vector<8x1xi1> to vector<8x32xi1>
    %269 = arith.select %268, %266, %179 : vector<8x32xi1>, vector<8x32xf32>
    %270 = vector.shape_cast %196 : vector<8x1xi1> to vector<8x1xi1>
    %271 = vector.broadcast %270 : vector<8x1xi1> to vector<8x32xi1>
    %272 = arith.select %271, %264, %182 : vector<8x32xi1>, vector<8x32xf32>
    %cst_69 = arith.constant 0.000000e+00 : f32
    %273 = vector.shape_cast %196 : vector<8x1xi1> to vector<8x1xi1>
    %274 = vector.broadcast %273 : vector<8x1xi1> to vector<8x32xi1>
    %275 = vector.broadcast %cst_69 : f32 to vector<8x32xf32>
    %276 = arith.select %274, %266, %275 : vector<8x32xi1>, vector<8x32xf32>
    %c2_70 = arith.constant 2 : index
    %c0_71 = arith.constant 0 : index
    %c0_72 = arith.constant 0 : index
    %277 = vector.load %arg11[%c2_70, %c0_71, %c0_72] : memref<8x8x32xf32, #tpu.memory_space<vmem>>, vector<1x8x32xf32>
    %278 = vector.shape_cast %277 : vector<1x8x32xf32> to vector<8x32xf32>
    %279 = vector.shape_cast %236 : vector<8x32xf32> to vector<1x8x32xf32>
    tpu.vector_store %arg11[%c2_70, %c0_71, %c0_72], %279 {strides = array<i32>} : memref<8x8x32xf32, #tpu.memory_space<vmem>>, vector<1x8x32xf32>,
    %c5_73 = arith.constant 5 : index
    %c0_74 = arith.constant 0 : index
    %c0_75 = arith.constant 0 : index
    %280 = vector.load %arg12[%c5_73, %c0_74, %c0_75] : memref<8x8x32xf32, #tpu.memory_space<vmem>>, vector<1x8x32xf32>
    %281 = vector.shape_cast %280 : vector<1x8x32xf32> to vector<8x32xf32>
    %282 = vector.shape_cast %276 : vector<8x32xf32> to vector<1x8x32xf32>
    tpu.vector_store %arg12[%c5_73, %c0_74, %c0_75], %282 {strides = array<i32>} : memref<8x8x32xf32, #tpu.memory_space<vmem>>, vector<1x8x32xf32>,
    %c3_i32 = arith.constant 3 : i32
    %283 = vector.broadcast %c3_i32 : i32 to vector<8x1xi32>
    %284 = arith.cmpi sgt, %9, %283 : vector<8x1xi32>
    %c4_i32 = arith.constant 4 : i32
    %285 = vector.broadcast %c4_i32 : i32 to vector<8x1xi32>
    %286 = arith.cmpi sgt, %9, %285 : vector<8x1xi32>
    %c3 = arith.constant 3 : index
    %c0_76 = arith.constant 0 : index
    %c0_77 = arith.constant 0 : index
    %287 = vector.load %arg10[%c3, %c0_76, %c0_77] : memref<8x8x256xf32, #tpu.memory_space<vmem>>, vector<1x8x128xf32>
    %288 = vector.shape_cast %287 : vector<1x8x128xf32> to vector<8x128xf32>
    %289 = arith.truncf %229 : vector<8x32xf32> to vector<8x32xbf16>
    %cst_78 = arith.constant dense<0.000000e+00> : vector<8x128xf32>
    %290 = tpu.matmul %289, %10, %cst_78 {dimension_numbers = #tpu.dot_dimension_numbers<[1], [0], [0], [1], [0, 0, 1, 1], [], []>} : vector<8x32xbf16>, vector<32x128xbf16>, vector<8x128xf32> -> vector<8x128xf32>
    %291 = arith.addf %288, %290 : vector<8x128xf32>
    %292 = vector.extract_strided_slice %291 {offsets = [0, 0], sizes = [8, 32], strides = [1, 1]} : vector<8x128xf32> to vector<8x32xf32>
    %293 = arith.negf %292 : vector<8x32xf32>
    %294 = math.exp %293 : vector<8x32xf32>
    %cst_79 = arith.constant 1.000000e+00 : f32
    %295 = vector.broadcast %cst_79 : f32 to vector<8x32xf32>
    %296 = arith.addf %295, %294 : vector<8x32xf32>
    %297 = arith.divf %295, %296 : vector<8x32xf32>
    %298 = vector.extract_strided_slice %291 {offsets = [0, 32], sizes = [8, 32], strides = [1, 1]} : vector<8x128xf32> to vector<8x32xf32>
    %299 = arith.negf %298 : vector<8x32xf32>
    %300 = math.exp %299 : vector<8x32xf32>
    %cst_80 = arith.constant 1.000000e+00 : f32
    %301 = vector.broadcast %cst_80 : f32 to vector<8x32xf32>
    %302 = arith.addf %301, %300 : vector<8x32xf32>
    %303 = arith.divf %301, %302 : vector<8x32xf32>
    %304 = vector.extract_strided_slice %291 {offsets = [0, 64], sizes = [8, 32], strides = [1, 1]} : vector<8x128xf32> to vector<8x32xf32>
    %305 = math.tanh %304 : vector<8x32xf32>
    %306 = vector.extract_strided_slice %291 {offsets = [0, 96], sizes = [8, 32], strides = [1, 1]} : vector<8x128xf32> to vector<8x32xf32>
    %307 = arith.negf %306 : vector<8x32xf32>
    %308 = math.exp %307 : vector<8x32xf32>
    %cst_81 = arith.constant 1.000000e+00 : f32
    %309 = vector.broadcast %cst_81 : f32 to vector<8x32xf32>
    %310 = arith.addf %309, %308 : vector<8x32xf32>
    %311 = arith.divf %309, %310 : vector<8x32xf32>
    %312 = arith.mulf %303, %232 : vector<8x32xf32>
    %313 = arith.mulf %297, %305 : vector<8x32xf32>
    %314 = arith.addf %312, %313 : vector<8x32xf32>
    %315 = math.tanh %314 : vector<8x32xf32>
    %316 = arith.mulf %311, %315 : vector<8x32xf32>
    %317 = vector.shape_cast %284 : vector<8x1xi1> to vector<8x1xi1>
    %318 = vector.broadcast %317 : vector<8x1xi1> to vector<8x32xi1>
    %319 = arith.select %318, %316, %229 : vector<8x32xi1>, vector<8x32xf32>
    %320 = vector.shape_cast %284 : vector<8x1xi1> to vector<8x1xi1>
    %321 = vector.broadcast %320 : vector<8x1xi1> to vector<8x32xi1>
    %322 = arith.select %321, %314, %232 : vector<8x32xi1>, vector<8x32xf32>
    %cst_82 = arith.constant 0.000000e+00 : f32
    %323 = vector.shape_cast %284 : vector<8x1xi1> to vector<8x1xi1>
    %324 = vector.broadcast %323 : vector<8x1xi1> to vector<8x32xi1>
    %325 = vector.broadcast %cst_82 : f32 to vector<8x32xf32>
    %326 = arith.select %324, %316, %325 : vector<8x32xi1>, vector<8x32xf32>
    %c4 = arith.constant 4 : index
    %c0_83 = arith.constant 0 : index
    %c128_84 = arith.constant 128 : index
    %327 = vector.load %arg10[%c4, %c0_83, %c128_84] : memref<8x8x256xf32, #tpu.memory_space<vmem>>, vector<1x8x128xf32>
    %328 = vector.shape_cast %327 : vector<1x8x128xf32> to vector<8x128xf32>
    %329 = arith.truncf %269 : vector<8x32xf32> to vector<8x32xbf16>
    %cst_85 = arith.constant dense<0.000000e+00> : vector<8x128xf32>
    %330 = tpu.matmul %329, %11, %cst_85 {dimension_numbers = #tpu.dot_dimension_numbers<[1], [0], [0], [1], [0, 0, 1, 1], [], []>} : vector<8x32xbf16>, vector<32x128xbf16>, vector<8x128xf32> -> vector<8x128xf32>
    %331 = arith.addf %328, %330 : vector<8x128xf32>
    %332 = vector.extract_strided_slice %331 {offsets = [0, 0], sizes = [8, 32], strides = [1, 1]} : vector<8x128xf32> to vector<8x32xf32>
    %333 = arith.negf %332 : vector<8x32xf32>
    %334 = math.exp %333 : vector<8x32xf32>
    %cst_86 = arith.constant 1.000000e+00 : f32
    %335 = vector.broadcast %cst_86 : f32 to vector<8x32xf32>
    %336 = arith.addf %335, %334 : vector<8x32xf32>
    %337 = arith.divf %335, %336 : vector<8x32xf32>
    %338 = vector.extract_strided_slice %331 {offsets = [0, 32], sizes = [8, 32], strides = [1, 1]} : vector<8x128xf32> to vector<8x32xf32>
    %339 = arith.negf %338 : vector<8x32xf32>
    %340 = math.exp %339 : vector<8x32xf32>
    %cst_87 = arith.constant 1.000000e+00 : f32
    %341 = vector.broadcast %cst_87 : f32 to vector<8x32xf32>
    %342 = arith.addf %341, %340 : vector<8x32xf32>
    %343 = arith.divf %341, %342 : vector<8x32xf32>
    %344 = vector.extract_strided_slice %331 {offsets = [0, 64], sizes = [8, 32], strides = [1, 1]} : vector<8x128xf32> to vector<8x32xf32>
    %345 = math.tanh %344 : vector<8x32xf32>
    %346 = vector.extract_strided_slice %331 {offsets = [0, 96], sizes = [8, 32], strides = [1, 1]} : vector<8x128xf32> to vector<8x32xf32>
    %347 = arith.negf %346 : vector<8x32xf32>
    %348 = math.exp %347 : vector<8x32xf32>
    %cst_88 = arith.constant 1.000000e+00 : f32
    %349 = vector.broadcast %cst_88 : f32 to vector<8x32xf32>
    %350 = arith.addf %349, %348 : vector<8x32xf32>
    %351 = arith.divf %349, %350 : vector<8x32xf32>
    %352 = arith.mulf %343, %272 : vector<8x32xf32>
    %353 = arith.mulf %337, %345 : vector<8x32xf32>
    %354 = arith.addf %352, %353 : vector<8x32xf32>
    %355 = math.tanh %354 : vector<8x32xf32>
    %356 = arith.mulf %351, %355 : vector<8x32xf32>
    %357 = vector.shape_cast %286 : vector<8x1xi1> to vector<8x1xi1>
    %358 = vector.broadcast %357 : vector<8x1xi1> to vector<8x32xi1>
    %359 = arith.select %358, %356, %269 : vector<8x32xi1>, vector<8x32xf32>
    %360 = vector.shape_cast %286 : vector<8x1xi1> to vector<8x1xi1>
    %361 = vector.broadcast %360 : vector<8x1xi1> to vector<8x32xi1>
    %362 = arith.select %361, %354, %272 : vector<8x32xi1>, vector<8x32xf32>
    %cst_89 = arith.constant 0.000000e+00 : f32
    %363 = vector.shape_cast %286 : vector<8x1xi1> to vector<8x1xi1>
    %364 = vector.broadcast %363 : vector<8x1xi1> to vector<8x32xi1>
    %365 = vector.broadcast %cst_89 : f32 to vector<8x32xf32>
    %366 = arith.select %364, %356, %365 : vector<8x32xi1>, vector<8x32xf32>
    %c3_90 = arith.constant 3 : index
    %c0_91 = arith.constant 0 : index
    %c0_92 = arith.constant 0 : index
    %367 = vector.load %arg11[%c3_90, %c0_91, %c0_92] : memref<8x8x32xf32, #tpu.memory_space<vmem>>, vector<1x8x32xf32>
    %368 = vector.shape_cast %367 : vector<1x8x32xf32> to vector<8x32xf32>
    %369 = vector.shape_cast %326 : vector<8x32xf32> to vector<1x8x32xf32>
    tpu.vector_store %arg11[%c3_90, %c0_91, %c0_92], %369 {strides = array<i32>} : memref<8x8x32xf32, #tpu.memory_space<vmem>>, vector<1x8x32xf32>,
    %c4_93 = arith.constant 4 : index
    %c0_94 = arith.constant 0 : index
    %c0_95 = arith.constant 0 : index
    %370 = vector.load %arg12[%c4_93, %c0_94, %c0_95] : memref<8x8x32xf32, #tpu.memory_space<vmem>>, vector<1x8x32xf32>
    %371 = vector.shape_cast %370 : vector<1x8x32xf32> to vector<8x32xf32>
    %372 = vector.shape_cast %366 : vector<8x32xf32> to vector<1x8x32xf32>
    tpu.vector_store %arg12[%c4_93, %c0_94, %c0_95], %372 {strides = array<i32>} : memref<8x8x32xf32, #tpu.memory_space<vmem>>, vector<1x8x32xf32>,
    %c4_i32_96 = arith.constant 4 : i32
    %373 = vector.broadcast %c4_i32_96 : i32 to vector<8x1xi32>
    %374 = arith.cmpi sgt, %9, %373 : vector<8x1xi32>
    %c3_i32_97 = arith.constant 3 : i32
    %375 = vector.broadcast %c3_i32_97 : i32 to vector<8x1xi32>
    %376 = arith.cmpi sgt, %9, %375 : vector<8x1xi32>
    %c4_98 = arith.constant 4 : index
    %c0_99 = arith.constant 0 : index
    %c0_100 = arith.constant 0 : index
    %377 = vector.load %arg10[%c4_98, %c0_99, %c0_100] : memref<8x8x256xf32, #tpu.memory_space<vmem>>, vector<1x8x128xf32>
    %378 = vector.shape_cast %377 : vector<1x8x128xf32> to vector<8x128xf32>
    %379 = arith.truncf %319 : vector<8x32xf32> to vector<8x32xbf16>
    %cst_101 = arith.constant dense<0.000000e+00> : vector<8x128xf32>
    %380 = tpu.matmul %379, %10, %cst_101 {dimension_numbers = #tpu.dot_dimension_numbers<[1], [0], [0], [1], [0, 0, 1, 1], [], []>} : vector<8x32xbf16>, vector<32x128xbf16>, vector<8x128xf32> -> vector<8x128xf32>
    %381 = arith.addf %378, %380 : vector<8x128xf32>
    %382 = vector.extract_strided_slice %381 {offsets = [0, 0], sizes = [8, 32], strides = [1, 1]} : vector<8x128xf32> to vector<8x32xf32>
    %383 = arith.negf %382 : vector<8x32xf32>
    %384 = math.exp %383 : vector<8x32xf32>
    %cst_102 = arith.constant 1.000000e+00 : f32
    %385 = vector.broadcast %cst_102 : f32 to vector<8x32xf32>
    %386 = arith.addf %385, %384 : vector<8x32xf32>
    %387 = arith.divf %385, %386 : vector<8x32xf32>
    %388 = vector.extract_strided_slice %381 {offsets = [0, 32], sizes = [8, 32], strides = [1, 1]} : vector<8x128xf32> to vector<8x32xf32>
    %389 = arith.negf %388 : vector<8x32xf32>
    %390 = math.exp %389 : vector<8x32xf32>
    %cst_103 = arith.constant 1.000000e+00 : f32
    %391 = vector.broadcast %cst_103 : f32 to vector<8x32xf32>
    %392 = arith.addf %391, %390 : vector<8x32xf32>
    %393 = arith.divf %391, %392 : vector<8x32xf32>
    %394 = vector.extract_strided_slice %381 {offsets = [0, 64], sizes = [8, 32], strides = [1, 1]} : vector<8x128xf32> to vector<8x32xf32>
    %395 = math.tanh %394 : vector<8x32xf32>
    %396 = vector.extract_strided_slice %381 {offsets = [0, 96], sizes = [8, 32], strides = [1, 1]} : vector<8x128xf32> to vector<8x32xf32>
    %397 = arith.negf %396 : vector<8x32xf32>
    %398 = math.exp %397 : vector<8x32xf32>
    %cst_104 = arith.constant 1.000000e+00 : f32
    %399 = vector.broadcast %cst_104 : f32 to vector<8x32xf32>
    %400 = arith.addf %399, %398 : vector<8x32xf32>
    %401 = arith.divf %399, %400 : vector<8x32xf32>
    %402 = arith.mulf %393, %322 : vector<8x32xf32>
    %403 = arith.mulf %387, %395 : vector<8x32xf32>
    %404 = arith.addf %402, %403 : vector<8x32xf32>
    %405 = math.tanh %404 : vector<8x32xf32>
    %406 = arith.mulf %401, %405 : vector<8x32xf32>
    %407 = vector.shape_cast %374 : vector<8x1xi1> to vector<8x1xi1>
    %408 = vector.broadcast %407 : vector<8x1xi1> to vector<8x32xi1>
    %409 = arith.select %408, %406, %319 : vector<8x32xi1>, vector<8x32xf32>
    %410 = vector.shape_cast %374 : vector<8x1xi1> to vector<8x1xi1>
    %411 = vector.broadcast %410 : vector<8x1xi1> to vector<8x32xi1>
    %412 = arith.select %411, %404, %322 : vector<8x32xi1>, vector<8x32xf32>
    %cst_105 = arith.constant 0.000000e+00 : f32
    %413 = vector.shape_cast %374 : vector<8x1xi1> to vector<8x1xi1>
    %414 = vector.broadcast %413 : vector<8x1xi1> to vector<8x32xi1>
    %415 = vector.broadcast %cst_105 : f32 to vector<8x32xf32>
    %416 = arith.select %414, %406, %415 : vector<8x32xi1>, vector<8x32xf32>
    %c3_106 = arith.constant 3 : index
    %c0_107 = arith.constant 0 : index
    %c128_108 = arith.constant 128 : index
    %417 = vector.load %arg10[%c3_106, %c0_107, %c128_108] : memref<8x8x256xf32, #tpu.memory_space<vmem>>, vector<1x8x128xf32>
    %418 = vector.shape_cast %417 : vector<1x8x128xf32> to vector<8x128xf32>
    %419 = arith.truncf %359 : vector<8x32xf32> to vector<8x32xbf16>
    %cst_109 = arith.constant dense<0.000000e+00> : vector<8x128xf32>
    %420 = tpu.matmul %419, %11, %cst_109 {dimension_numbers = #tpu.dot_dimension_numbers<[1], [0], [0], [1], [0, 0, 1, 1], [], []>} : vector<8x32xbf16>, vector<32x128xbf16>, vector<8x128xf32> -> vector<8x128xf32>
    %421 = arith.addf %418, %420 : vector<8x128xf32>
    %422 = vector.extract_strided_slice %421 {offsets = [0, 0], sizes = [8, 32], strides = [1, 1]} : vector<8x128xf32> to vector<8x32xf32>
    %423 = arith.negf %422 : vector<8x32xf32>
    %424 = math.exp %423 : vector<8x32xf32>
    %cst_110 = arith.constant 1.000000e+00 : f32
    %425 = vector.broadcast %cst_110 : f32 to vector<8x32xf32>
    %426 = arith.addf %425, %424 : vector<8x32xf32>
    %427 = arith.divf %425, %426 : vector<8x32xf32>
    %428 = vector.extract_strided_slice %421 {offsets = [0, 32], sizes = [8, 32], strides = [1, 1]} : vector<8x128xf32> to vector<8x32xf32>
    %429 = arith.negf %428 : vector<8x32xf32>
    %430 = math.exp %429 : vector<8x32xf32>
    %cst_111 = arith.constant 1.000000e+00 : f32
    %431 = vector.broadcast %cst_111 : f32 to vector<8x32xf32>
    %432 = arith.addf %431, %430 : vector<8x32xf32>
    %433 = arith.divf %431, %432 : vector<8x32xf32>
    %434 = vector.extract_strided_slice %421 {offsets = [0, 64], sizes = [8, 32], strides = [1, 1]} : vector<8x128xf32> to vector<8x32xf32>
    %435 = math.tanh %434 : vector<8x32xf32>
    %436 = vector.extract_strided_slice %421 {offsets = [0, 96], sizes = [8, 32], strides = [1, 1]} : vector<8x128xf32> to vector<8x32xf32>
    %437 = arith.negf %436 : vector<8x32xf32>
    %438 = math.exp %437 : vector<8x32xf32>
    %cst_112 = arith.constant 1.000000e+00 : f32
    %439 = vector.broadcast %cst_112 : f32 to vector<8x32xf32>
    %440 = arith.addf %439, %438 : vector<8x32xf32>
    %441 = arith.divf %439, %440 : vector<8x32xf32>
    %442 = arith.mulf %433, %362 : vector<8x32xf32>
    %443 = arith.mulf %427, %435 : vector<8x32xf32>
    %444 = arith.addf %442, %443 : vector<8x32xf32>
    %445 = math.tanh %444 : vector<8x32xf32>
    %446 = arith.mulf %441, %445 : vector<8x32xf32>
    %447 = vector.shape_cast %376 : vector<8x1xi1> to vector<8x1xi1>
    %448 = vector.broadcast %447 : vector<8x1xi1> to vector<8x32xi1>
    %449 = arith.select %448, %446, %359 : vector<8x32xi1>, vector<8x32xf32>
    %450 = vector.shape_cast %376 : vector<8x1xi1> to vector<8x1xi1>
    %451 = vector.broadcast %450 : vector<8x1xi1> to vector<8x32xi1>
    %452 = arith.select %451, %444, %362 : vector<8x32xi1>, vector<8x32xf32>
    %cst_113 = arith.constant 0.000000e+00 : f32
    %453 = vector.shape_cast %376 : vector<8x1xi1> to vector<8x1xi1>
    %454 = vector.broadcast %453 : vector<8x1xi1> to vector<8x32xi1>
    %455 = vector.broadcast %cst_113 : f32 to vector<8x32xf32>
    %456 = arith.select %454, %446, %455 : vector<8x32xi1>, vector<8x32xf32>
    %c4_114 = arith.constant 4 : index
    %c0_115 = arith.constant 0 : index
    %c0_116 = arith.constant 0 : index
    %457 = vector.load %arg11[%c4_114, %c0_115, %c0_116] : memref<8x8x32xf32, #tpu.memory_space<vmem>>, vector<1x8x32xf32>
    %458 = vector.shape_cast %457 : vector<1x8x32xf32> to vector<8x32xf32>
    %459 = vector.shape_cast %416 : vector<8x32xf32> to vector<1x8x32xf32>
    tpu.vector_store %arg11[%c4_114, %c0_115, %c0_116], %459 {strides = array<i32>} : memref<8x8x32xf32, #tpu.memory_space<vmem>>, vector<1x8x32xf32>,
    %c3_117 = arith.constant 3 : index
    %c0_118 = arith.constant 0 : index
    %c0_119 = arith.constant 0 : index
    %460 = vector.load %arg12[%c3_117, %c0_118, %c0_119] : memref<8x8x32xf32, #tpu.memory_space<vmem>>, vector<1x8x32xf32>
    %461 = vector.shape_cast %460 : vector<1x8x32xf32> to vector<8x32xf32>
    %462 = vector.shape_cast %456 : vector<8x32xf32> to vector<1x8x32xf32>
    tpu.vector_store %arg12[%c3_117, %c0_118, %c0_119], %462 {strides = array<i32>} : memref<8x8x32xf32, #tpu.memory_space<vmem>>, vector<1x8x32xf32>,
    %c5_i32_120 = arith.constant 5 : i32
    %463 = vector.broadcast %c5_i32_120 : i32 to vector<8x1xi32>
    %464 = arith.cmpi sgt, %9, %463 : vector<8x1xi32>
    %c2_i32_121 = arith.constant 2 : i32
    %465 = vector.broadcast %c2_i32_121 : i32 to vector<8x1xi32>
    %466 = arith.cmpi sgt, %9, %465 : vector<8x1xi32>
    %c5_122 = arith.constant 5 : index
    %c0_123 = arith.constant 0 : index
    %c0_124 = arith.constant 0 : index
    %467 = vector.load %arg10[%c5_122, %c0_123, %c0_124] : memref<8x8x256xf32, #tpu.memory_space<vmem>>, vector<1x8x128xf32>
    %468 = vector.shape_cast %467 : vector<1x8x128xf32> to vector<8x128xf32>
    %469 = arith.truncf %409 : vector<8x32xf32> to vector<8x32xbf16>
    %cst_125 = arith.constant dense<0.000000e+00> : vector<8x128xf32>
    %470 = tpu.matmul %469, %10, %cst_125 {dimension_numbers = #tpu.dot_dimension_numbers<[1], [0], [0], [1], [0, 0, 1, 1], [], []>} : vector<8x32xbf16>, vector<32x128xbf16>, vector<8x128xf32> -> vector<8x128xf32>
    %471 = arith.addf %468, %470 : vector<8x128xf32>
    %472 = vector.extract_strided_slice %471 {offsets = [0, 0], sizes = [8, 32], strides = [1, 1]} : vector<8x128xf32> to vector<8x32xf32>
    %473 = arith.negf %472 : vector<8x32xf32>
    %474 = math.exp %473 : vector<8x32xf32>
    %cst_126 = arith.constant 1.000000e+00 : f32
    %475 = vector.broadcast %cst_126 : f32 to vector<8x32xf32>
    %476 = arith.addf %475, %474 : vector<8x32xf32>
    %477 = arith.divf %475, %476 : vector<8x32xf32>
    %478 = vector.extract_strided_slice %471 {offsets = [0, 32], sizes = [8, 32], strides = [1, 1]} : vector<8x128xf32> to vector<8x32xf32>
    %479 = arith.negf %478 : vector<8x32xf32>
    %480 = math.exp %479 : vector<8x32xf32>
    %cst_127 = arith.constant 1.000000e+00 : f32
    %481 = vector.broadcast %cst_127 : f32 to vector<8x32xf32>
    %482 = arith.addf %481, %480 : vector<8x32xf32>
    %483 = arith.divf %481, %482 : vector<8x32xf32>
    %484 = vector.extract_strided_slice %471 {offsets = [0, 64], sizes = [8, 32], strides = [1, 1]} : vector<8x128xf32> to vector<8x32xf32>
    %485 = math.tanh %484 : vector<8x32xf32>
    %486 = vector.extract_strided_slice %471 {offsets = [0, 96], sizes = [8, 32], strides = [1, 1]} : vector<8x128xf32> to vector<8x32xf32>
    %487 = arith.negf %486 : vector<8x32xf32>
    %488 = math.exp %487 : vector<8x32xf32>
    %cst_128 = arith.constant 1.000000e+00 : f32
    %489 = vector.broadcast %cst_128 : f32 to vector<8x32xf32>
    %490 = arith.addf %489, %488 : vector<8x32xf32>
    %491 = arith.divf %489, %490 : vector<8x32xf32>
    %492 = arith.mulf %483, %412 : vector<8x32xf32>
    %493 = arith.mulf %477, %485 : vector<8x32xf32>
    %494 = arith.addf %492, %493 : vector<8x32xf32>
    %495 = math.tanh %494 : vector<8x32xf32>
    %496 = arith.mulf %491, %495 : vector<8x32xf32>
    %497 = vector.shape_cast %464 : vector<8x1xi1> to vector<8x1xi1>
    %498 = vector.broadcast %497 : vector<8x1xi1> to vector<8x32xi1>
    %499 = arith.select %498, %496, %409 : vector<8x32xi1>, vector<8x32xf32>
    %500 = vector.shape_cast %464 : vector<8x1xi1> to vector<8x1xi1>
    %501 = vector.broadcast %500 : vector<8x1xi1> to vector<8x32xi1>
    %502 = arith.select %501, %494, %412 : vector<8x32xi1>, vector<8x32xf32>
    %cst_129 = arith.constant 0.000000e+00 : f32
    %503 = vector.shape_cast %464 : vector<8x1xi1> to vector<8x1xi1>
    %504 = vector.broadcast %503 : vector<8x1xi1> to vector<8x32xi1>
    %505 = vector.broadcast %cst_129 : f32 to vector<8x32xf32>
    %506 = arith.select %504, %496, %505 : vector<8x32xi1>, vector<8x32xf32>
    %c2_130 = arith.constant 2 : index
    %c0_131 = arith.constant 0 : index
    %c128_132 = arith.constant 128 : index
    %507 = vector.load %arg10[%c2_130, %c0_131, %c128_132] : memref<8x8x256xf32, #tpu.memory_space<vmem>>, vector<1x8x128xf32>
    %508 = vector.shape_cast %507 : vector<1x8x128xf32> to vector<8x128xf32>
    %509 = arith.truncf %449 : vector<8x32xf32> to vector<8x32xbf16>
    %cst_133 = arith.constant dense<0.000000e+00> : vector<8x128xf32>
    %510 = tpu.matmul %509, %11, %cst_133 {dimension_numbers = #tpu.dot_dimension_numbers<[1], [0], [0], [1], [0, 0, 1, 1], [], []>} : vector<8x32xbf16>, vector<32x128xbf16>, vector<8x128xf32> -> vector<8x128xf32>
    %511 = arith.addf %508, %510 : vector<8x128xf32>
    %512 = vector.extract_strided_slice %511 {offsets = [0, 0], sizes = [8, 32], strides = [1, 1]} : vector<8x128xf32> to vector<8x32xf32>
    %513 = arith.negf %512 : vector<8x32xf32>
    %514 = math.exp %513 : vector<8x32xf32>
    %cst_134 = arith.constant 1.000000e+00 : f32
    %515 = vector.broadcast %cst_134 : f32 to vector<8x32xf32>
    %516 = arith.addf %515, %514 : vector<8x32xf32>
    %517 = arith.divf %515, %516 : vector<8x32xf32>
    %518 = vector.extract_strided_slice %511 {offsets = [0, 32], sizes = [8, 32], strides = [1, 1]} : vector<8x128xf32> to vector<8x32xf32>
    %519 = arith.negf %518 : vector<8x32xf32>
    %520 = math.exp %519 : vector<8x32xf32>
    %cst_135 = arith.constant 1.000000e+00 : f32
    %521 = vector.broadcast %cst_135 : f32 to vector<8x32xf32>
    %522 = arith.addf %521, %520 : vector<8x32xf32>
    %523 = arith.divf %521, %522 : vector<8x32xf32>
    %524 = vector.extract_strided_slice %511 {offsets = [0, 64], sizes = [8, 32], strides = [1, 1]} : vector<8x128xf32> to vector<8x32xf32>
    %525 = math.tanh %524 : vector<8x32xf32>
    %526 = vector.extract_strided_slice %511 {offsets = [0, 96], sizes = [8, 32], strides = [1, 1]} : vector<8x128xf32> to vector<8x32xf32>
    %527 = arith.negf %526 : vector<8x32xf32>
    %528 = math.exp %527 : vector<8x32xf32>
    %cst_136 = arith.constant 1.000000e+00 : f32
    %529 = vector.broadcast %cst_136 : f32 to vector<8x32xf32>
    %530 = arith.addf %529, %528 : vector<8x32xf32>
    %531 = arith.divf %529, %530 : vector<8x32xf32>
    %532 = arith.mulf %523, %452 : vector<8x32xf32>
    %533 = arith.mulf %517, %525 : vector<8x32xf32>
    %534 = arith.addf %532, %533 : vector<8x32xf32>
    %535 = math.tanh %534 : vector<8x32xf32>
    %536 = arith.mulf %531, %535 : vector<8x32xf32>
    %537 = vector.shape_cast %466 : vector<8x1xi1> to vector<8x1xi1>
    %538 = vector.broadcast %537 : vector<8x1xi1> to vector<8x32xi1>
    %539 = arith.select %538, %536, %449 : vector<8x32xi1>, vector<8x32xf32>
    %540 = vector.shape_cast %466 : vector<8x1xi1> to vector<8x1xi1>
    %541 = vector.broadcast %540 : vector<8x1xi1> to vector<8x32xi1>
    %542 = arith.select %541, %534, %452 : vector<8x32xi1>, vector<8x32xf32>
    %cst_137 = arith.constant 0.000000e+00 : f32
    %543 = vector.shape_cast %466 : vector<8x1xi1> to vector<8x1xi1>
    %544 = vector.broadcast %543 : vector<8x1xi1> to vector<8x32xi1>
    %545 = vector.broadcast %cst_137 : f32 to vector<8x32xf32>
    %546 = arith.select %544, %536, %545 : vector<8x32xi1>, vector<8x32xf32>
    %c5_138 = arith.constant 5 : index
    %c0_139 = arith.constant 0 : index
    %c0_140 = arith.constant 0 : index
    %547 = vector.load %arg11[%c5_138, %c0_139, %c0_140] : memref<8x8x32xf32, #tpu.memory_space<vmem>>, vector<1x8x32xf32>
    %548 = vector.shape_cast %547 : vector<1x8x32xf32> to vector<8x32xf32>
    %549 = vector.shape_cast %506 : vector<8x32xf32> to vector<1x8x32xf32>
    tpu.vector_store %arg11[%c5_138, %c0_139, %c0_140], %549 {strides = array<i32>} : memref<8x8x32xf32, #tpu.memory_space<vmem>>, vector<1x8x32xf32>,
    %c2_141 = arith.constant 2 : index
    %c0_142 = arith.constant 0 : index
    %c0_143 = arith.constant 0 : index
    %550 = vector.load %arg12[%c2_141, %c0_142, %c0_143] : memref<8x8x32xf32, #tpu.memory_space<vmem>>, vector<1x8x32xf32>
    %551 = vector.shape_cast %550 : vector<1x8x32xf32> to vector<8x32xf32>
    %552 = vector.shape_cast %546 : vector<8x32xf32> to vector<1x8x32xf32>
    tpu.vector_store %arg12[%c2_141, %c0_142, %c0_143], %552 {strides = array<i32>} : memref<8x8x32xf32, #tpu.memory_space<vmem>>, vector<1x8x32xf32>,
    %c6_i32_144 = arith.constant 6 : i32
    %553 = vector.broadcast %c6_i32_144 : i32 to vector<8x1xi32>
    %554 = arith.cmpi sgt, %9, %553 : vector<8x1xi32>
    %c1_i32_145 = arith.constant 1 : i32
    %555 = vector.broadcast %c1_i32_145 : i32 to vector<8x1xi32>
    %556 = arith.cmpi sgt, %9, %555 : vector<8x1xi32>
    %c6_146 = arith.constant 6 : index
    %c0_147 = arith.constant 0 : index
    %c0_148 = arith.constant 0 : index
    %557 = vector.load %arg10[%c6_146, %c0_147, %c0_148] : memref<8x8x256xf32, #tpu.memory_space<vmem>>, vector<1x8x128xf32>
    %558 = vector.shape_cast %557 : vector<1x8x128xf32> to vector<8x128xf32>
    %559 = arith.truncf %499 : vector<8x32xf32> to vector<8x32xbf16>
    %cst_149 = arith.constant dense<0.000000e+00> : vector<8x128xf32>
    %560 = tpu.matmul %559, %10, %cst_149 {dimension_numbers = #tpu.dot_dimension_numbers<[1], [0], [0], [1], [0, 0, 1, 1], [], []>} : vector<8x32xbf16>, vector<32x128xbf16>, vector<8x128xf32> -> vector<8x128xf32>
    %561 = arith.addf %558, %560 : vector<8x128xf32>
    %562 = vector.extract_strided_slice %561 {offsets = [0, 0], sizes = [8, 32], strides = [1, 1]} : vector<8x128xf32> to vector<8x32xf32>
    %563 = arith.negf %562 : vector<8x32xf32>
    %564 = math.exp %563 : vector<8x32xf32>
    %cst_150 = arith.constant 1.000000e+00 : f32
    %565 = vector.broadcast %cst_150 : f32 to vector<8x32xf32>
    %566 = arith.addf %565, %564 : vector<8x32xf32>
    %567 = arith.divf %565, %566 : vector<8x32xf32>
    %568 = vector.extract_strided_slice %561 {offsets = [0, 32], sizes = [8, 32], strides = [1, 1]} : vector<8x128xf32> to vector<8x32xf32>
    %569 = arith.negf %568 : vector<8x32xf32>
    %570 = math.exp %569 : vector<8x32xf32>
    %cst_151 = arith.constant 1.000000e+00 : f32
    %571 = vector.broadcast %cst_151 : f32 to vector<8x32xf32>
    %572 = arith.addf %571, %570 : vector<8x32xf32>
    %573 = arith.divf %571, %572 : vector<8x32xf32>
    %574 = vector.extract_strided_slice %561 {offsets = [0, 64], sizes = [8, 32], strides = [1, 1]} : vector<8x128xf32> to vector<8x32xf32>
    %575 = math.tanh %574 : vector<8x32xf32>
    %576 = vector.extract_strided_slice %561 {offsets = [0, 96], sizes = [8, 32], strides = [1, 1]} : vector<8x128xf32> to vector<8x32xf32>
    %577 = arith.negf %576 : vector<8x32xf32>
    %578 = math.exp %577 : vector<8x32xf32>
    %cst_152 = arith.constant 1.000000e+00 : f32
    %579 = vector.broadcast %cst_152 : f32 to vector<8x32xf32>
    %580 = arith.addf %579, %578 : vector<8x32xf32>
    %581 = arith.divf %579, %580 : vector<8x32xf32>
    %582 = arith.mulf %573, %502 : vector<8x32xf32>
    %583 = arith.mulf %567, %575 : vector<8x32xf32>
    %584 = arith.addf %582, %583 : vector<8x32xf32>
    %585 = math.tanh %584 : vector<8x32xf32>
    %586 = arith.mulf %581, %585 : vector<8x32xf32>
    %587 = vector.shape_cast %554 : vector<8x1xi1> to vector<8x1xi1>
    %588 = vector.broadcast %587 : vector<8x1xi1> to vector<8x32xi1>
    %589 = arith.select %588, %586, %499 : vector<8x32xi1>, vector<8x32xf32>
    %590 = vector.shape_cast %554 : vector<8x1xi1> to vector<8x1xi1>
    %591 = vector.broadcast %590 : vector<8x1xi1> to vector<8x32xi1>
    %592 = arith.select %591, %584, %502 : vector<8x32xi1>, vector<8x32xf32>
    %cst_153 = arith.constant 0.000000e+00 : f32
    %593 = vector.shape_cast %554 : vector<8x1xi1> to vector<8x1xi1>
    %594 = vector.broadcast %593 : vector<8x1xi1> to vector<8x32xi1>
    %595 = vector.broadcast %cst_153 : f32 to vector<8x32xf32>
    %596 = arith.select %594, %586, %595 : vector<8x32xi1>, vector<8x32xf32>
    %c1_154 = arith.constant 1 : index
    %c0_155 = arith.constant 0 : index
    %c128_156 = arith.constant 128 : index
    %597 = vector.load %arg10[%c1_154, %c0_155, %c128_156] : memref<8x8x256xf32, #tpu.memory_space<vmem>>, vector<1x8x128xf32>
    %598 = vector.shape_cast %597 : vector<1x8x128xf32> to vector<8x128xf32>
    %599 = arith.truncf %539 : vector<8x32xf32> to vector<8x32xbf16>
    %cst_157 = arith.constant dense<0.000000e+00> : vector<8x128xf32>
    %600 = tpu.matmul %599, %11, %cst_157 {dimension_numbers = #tpu.dot_dimension_numbers<[1], [0], [0], [1], [0, 0, 1, 1], [], []>} : vector<8x32xbf16>, vector<32x128xbf16>, vector<8x128xf32> -> vector<8x128xf32>
    %601 = arith.addf %598, %600 : vector<8x128xf32>
    %602 = vector.extract_strided_slice %601 {offsets = [0, 0], sizes = [8, 32], strides = [1, 1]} : vector<8x128xf32> to vector<8x32xf32>
    %603 = arith.negf %602 : vector<8x32xf32>
    %604 = math.exp %603 : vector<8x32xf32>
    %cst_158 = arith.constant 1.000000e+00 : f32
    %605 = vector.broadcast %cst_158 : f32 to vector<8x32xf32>
    %606 = arith.addf %605, %604 : vector<8x32xf32>
    %607 = arith.divf %605, %606 : vector<8x32xf32>
    %608 = vector.extract_strided_slice %601 {offsets = [0, 32], sizes = [8, 32], strides = [1, 1]} : vector<8x128xf32> to vector<8x32xf32>
    %609 = arith.negf %608 : vector<8x32xf32>
    %610 = math.exp %609 : vector<8x32xf32>
    %cst_159 = arith.constant 1.000000e+00 : f32
    %611 = vector.broadcast %cst_159 : f32 to vector<8x32xf32>
    %612 = arith.addf %611, %610 : vector<8x32xf32>
    %613 = arith.divf %611, %612 : vector<8x32xf32>
    %614 = vector.extract_strided_slice %601 {offsets = [0, 64], sizes = [8, 32], strides = [1, 1]} : vector<8x128xf32> to vector<8x32xf32>
    %615 = math.tanh %614 : vector<8x32xf32>
    %616 = vector.extract_strided_slice %601 {offsets = [0, 96], sizes = [8, 32], strides = [1, 1]} : vector<8x128xf32> to vector<8x32xf32>
    %617 = arith.negf %616 : vector<8x32xf32>
    %618 = math.exp %617 : vector<8x32xf32>
    %cst_160 = arith.constant 1.000000e+00 : f32
    %619 = vector.broadcast %cst_160 : f32 to vector<8x32xf32>
    %620 = arith.addf %619, %618 : vector<8x32xf32>
    %621 = arith.divf %619, %620 : vector<8x32xf32>
    %622 = arith.mulf %613, %542 : vector<8x32xf32>
    %623 = arith.mulf %607, %615 : vector<8x32xf32>
    %624 = arith.addf %622, %623 : vector<8x32xf32>
    %625 = math.tanh %624 : vector<8x32xf32>
    %626 = arith.mulf %621, %625 : vector<8x32xf32>
    %627 = vector.shape_cast %556 : vector<8x1xi1> to vector<8x1xi1>
    %628 = vector.broadcast %627 : vector<8x1xi1> to vector<8x32xi1>
    %629 = arith.select %628, %626, %539 : vector<8x32xi1>, vector<8x32xf32>
    %630 = vector.shape_cast %556 : vector<8x1xi1> to vector<8x1xi1>
    %631 = vector.broadcast %630 : vector<8x1xi1> to vector<8x32xi1>
    %632 = arith.select %631, %624, %542 : vector<8x32xi1>, vector<8x32xf32>
    %cst_161 = arith.constant 0.000000e+00 : f32
    %633 = vector.shape_cast %556 : vector<8x1xi1> to vector<8x1xi1>
    %634 = vector.broadcast %633 : vector<8x1xi1> to vector<8x32xi1>
    %635 = vector.broadcast %cst_161 : f32 to vector<8x32xf32>
    %636 = arith.select %634, %626, %635 : vector<8x32xi1>, vector<8x32xf32>
    %c6_162 = arith.constant 6 : index
    %c0_163 = arith.constant 0 : index
    %c0_164 = arith.constant 0 : index
    %637 = vector.load %arg11[%c6_162, %c0_163, %c0_164] : memref<8x8x32xf32, #tpu.memory_space<vmem>>, vector<1x8x32xf32>
    %638 = vector.shape_cast %637 : vector<1x8x32xf32> to vector<8x32xf32>
    %639 = vector.shape_cast %596 : vector<8x32xf32> to vector<1x8x32xf32>
    tpu.vector_store %arg11[%c6_162, %c0_163, %c0_164], %639 {strides = array<i32>} : memref<8x8x32xf32, #tpu.memory_space<vmem>>, vector<1x8x32xf32>,
    %c1_165 = arith.constant 1 : index
    %c0_166 = arith.constant 0 : index
    %c0_167 = arith.constant 0 : index
    %640 = vector.load %arg12[%c1_165, %c0_166, %c0_167] : memref<8x8x32xf32, #tpu.memory_space<vmem>>, vector<1x8x32xf32>
    %641 = vector.shape_cast %640 : vector<1x8x32xf32> to vector<8x32xf32>
    %642 = vector.shape_cast %636 : vector<8x32xf32> to vector<1x8x32xf32>
    tpu.vector_store %arg12[%c1_165, %c0_166, %c0_167], %642 {strides = array<i32>} : memref<8x8x32xf32, #tpu.memory_space<vmem>>, vector<1x8x32xf32>,
    %c7_i32_168 = arith.constant 7 : i32
    %643 = vector.broadcast %c7_i32_168 : i32 to vector<8x1xi32>
    %644 = arith.cmpi sgt, %9, %643 : vector<8x1xi32>
    %c0_i32_169 = arith.constant 0 : i32
    %645 = vector.broadcast %c0_i32_169 : i32 to vector<8x1xi32>
    %646 = arith.cmpi sgt, %9, %645 : vector<8x1xi32>
    %c7_170 = arith.constant 7 : index
    %c0_171 = arith.constant 0 : index
    %c0_172 = arith.constant 0 : index
    %647 = vector.load %arg10[%c7_170, %c0_171, %c0_172] : memref<8x8x256xf32, #tpu.memory_space<vmem>>, vector<1x8x128xf32>
    %648 = vector.shape_cast %647 : vector<1x8x128xf32> to vector<8x128xf32>
    %649 = arith.truncf %589 : vector<8x32xf32> to vector<8x32xbf16>
    %cst_173 = arith.constant dense<0.000000e+00> : vector<8x128xf32>
    %650 = tpu.matmul %649, %10, %cst_173 {dimension_numbers = #tpu.dot_dimension_numbers<[1], [0], [0], [1], [0, 0, 1, 1], [], []>} : vector<8x32xbf16>, vector<32x128xbf16>, vector<8x128xf32> -> vector<8x128xf32>
    %651 = arith.addf %648, %650 : vector<8x128xf32>
    %652 = vector.extract_strided_slice %651 {offsets = [0, 0], sizes = [8, 32], strides = [1, 1]} : vector<8x128xf32> to vector<8x32xf32>
    %653 = arith.negf %652 : vector<8x32xf32>
    %654 = math.exp %653 : vector<8x32xf32>
    %cst_174 = arith.constant 1.000000e+00 : f32
    %655 = vector.broadcast %cst_174 : f32 to vector<8x32xf32>
    %656 = arith.addf %655, %654 : vector<8x32xf32>
    %657 = arith.divf %655, %656 : vector<8x32xf32>
    %658 = vector.extract_strided_slice %651 {offsets = [0, 32], sizes = [8, 32], strides = [1, 1]} : vector<8x128xf32> to vector<8x32xf32>
    %659 = arith.negf %658 : vector<8x32xf32>
    %660 = math.exp %659 : vector<8x32xf32>
    %cst_175 = arith.constant 1.000000e+00 : f32
    %661 = vector.broadcast %cst_175 : f32 to vector<8x32xf32>
    %662 = arith.addf %661, %660 : vector<8x32xf32>
    %663 = arith.divf %661, %662 : vector<8x32xf32>
    %664 = vector.extract_strided_slice %651 {offsets = [0, 64], sizes = [8, 32], strides = [1, 1]} : vector<8x128xf32> to vector<8x32xf32>
    %665 = math.tanh %664 : vector<8x32xf32>
    %666 = vector.extract_strided_slice %651 {offsets = [0, 96], sizes = [8, 32], strides = [1, 1]} : vector<8x128xf32> to vector<8x32xf32>
    %667 = arith.negf %666 : vector<8x32xf32>
    %668 = math.exp %667 : vector<8x32xf32>
    %cst_176 = arith.constant 1.000000e+00 : f32
    %669 = vector.broadcast %cst_176 : f32 to vector<8x32xf32>
    %670 = arith.addf %669, %668 : vector<8x32xf32>
    %671 = arith.divf %669, %670 : vector<8x32xf32>
    %672 = arith.mulf %663, %592 : vector<8x32xf32>
    %673 = arith.mulf %657, %665 : vector<8x32xf32>
    %674 = arith.addf %672, %673 : vector<8x32xf32>
    %675 = math.tanh %674 : vector<8x32xf32>
    %676 = arith.mulf %671, %675 : vector<8x32xf32>
    %cst_177 = arith.constant 0.000000e+00 : f32
    %677 = vector.shape_cast %644 : vector<8x1xi1> to vector<8x1xi1>
    %678 = vector.broadcast %677 : vector<8x1xi1> to vector<8x32xi1>
    %679 = vector.broadcast %cst_177 : f32 to vector<8x32xf32>
    %680 = arith.select %678, %676, %679 : vector<8x32xi1>, vector<8x32xf32>
    %c0_178 = arith.constant 0 : index
    %c0_179 = arith.constant 0 : index
    %c128_180 = arith.constant 128 : index
    %681 = vector.load %arg10[%c0_178, %c0_179, %c128_180] : memref<8x8x256xf32, #tpu.memory_space<vmem>>, vector<1x8x128xf32>
    %682 = vector.shape_cast %681 : vector<1x8x128xf32> to vector<8x128xf32>
    %683 = arith.truncf %629 : vector<8x32xf32> to vector<8x32xbf16>
    %cst_181 = arith.constant dense<0.000000e+00> : vector<8x128xf32>
    %684 = tpu.matmul %683, %11, %cst_181 {dimension_numbers = #tpu.dot_dimension_numbers<[1], [0], [0], [1], [0, 0, 1, 1], [], []>} : vector<8x32xbf16>, vector<32x128xbf16>, vector<8x128xf32> -> vector<8x128xf32>
    %685 = arith.addf %682, %684 : vector<8x128xf32>
    %686 = vector.extract_strided_slice %685 {offsets = [0, 0], sizes = [8, 32], strides = [1, 1]} : vector<8x128xf32> to vector<8x32xf32>
    %687 = arith.negf %686 : vector<8x32xf32>
    %688 = math.exp %687 : vector<8x32xf32>
    %cst_182 = arith.constant 1.000000e+00 : f32
    %689 = vector.broadcast %cst_182 : f32 to vector<8x32xf32>
    %690 = arith.addf %689, %688 : vector<8x32xf32>
    %691 = arith.divf %689, %690 : vector<8x32xf32>
    %692 = vector.extract_strided_slice %685 {offsets = [0, 32], sizes = [8, 32], strides = [1, 1]} : vector<8x128xf32> to vector<8x32xf32>
    %693 = arith.negf %692 : vector<8x32xf32>
    %694 = math.exp %693 : vector<8x32xf32>
    %cst_183 = arith.constant 1.000000e+00 : f32
    %695 = vector.broadcast %cst_183 : f32 to vector<8x32xf32>
    %696 = arith.addf %695, %694 : vector<8x32xf32>
    %697 = arith.divf %695, %696 : vector<8x32xf32>
    %698 = vector.extract_strided_slice %685 {offsets = [0, 64], sizes = [8, 32], strides = [1, 1]} : vector<8x128xf32> to vector<8x32xf32>
    %699 = math.tanh %698 : vector<8x32xf32>
    %700 = vector.extract_strided_slice %685 {offsets = [0, 96], sizes = [8, 32], strides = [1, 1]} : vector<8x128xf32> to vector<8x32xf32>
    %701 = arith.negf %700 : vector<8x32xf32>
    %702 = math.exp %701 : vector<8x32xf32>
    %cst_184 = arith.constant 1.000000e+00 : f32
    %703 = vector.broadcast %cst_184 : f32 to vector<8x32xf32>
    %704 = arith.addf %703, %702 : vector<8x32xf32>
    %705 = arith.divf %703, %704 : vector<8x32xf32>
    %706 = arith.mulf %697, %632 : vector<8x32xf32>
    %707 = arith.mulf %691, %699 : vector<8x32xf32>
    %708 = arith.addf %706, %707 : vector<8x32xf32>
    %709 = math.tanh %708 : vector<8x32xf32>
    %710 = arith.mulf %705, %709 : vector<8x32xf32>
    %cst_185 = arith.constant 0.000000e+00 : f32
    %711 = vector.shape_cast %646 : vector<8x1xi1> to vector<8x1xi1>
    %712 = vector.broadcast %711 : vector<8x1xi1> to vector<8x32xi1>
    %713 = vector.broadcast %cst_185 : f32 to vector<8x32xf32>
    %714 = arith.select %712, %710, %713 : vector<8x32xi1>, vector<8x32xf32>
    %c7_186 = arith.constant 7 : index
    %c0_187 = arith.constant 0 : index
    %c0_188 = arith.constant 0 : index
    %715 = vector.load %arg11[%c7_186, %c0_187, %c0_188] : memref<8x8x32xf32, #tpu.memory_space<vmem>>, vector<1x8x32xf32>
    %716 = vector.shape_cast %715 : vector<1x8x32xf32> to vector<8x32xf32>
    %717 = vector.shape_cast %680 : vector<8x32xf32> to vector<1x8x32xf32>
    tpu.vector_store %arg11[%c7_186, %c0_187, %c0_188], %717 {strides = array<i32>} : memref<8x8x32xf32, #tpu.memory_space<vmem>>, vector<1x8x32xf32>,
    %c0_189 = arith.constant 0 : index
    %c0_190 = arith.constant 0 : index
    %c0_191 = arith.constant 0 : index
    %718 = vector.load %arg12[%c0_189, %c0_190, %c0_191] : memref<8x8x32xf32, #tpu.memory_space<vmem>>, vector<1x8x32xf32>
    %719 = vector.shape_cast %718 : vector<1x8x32xf32> to vector<8x32xf32>
    %720 = vector.shape_cast %714 : vector<8x32xf32> to vector<1x8x32xf32>
    tpu.vector_store %arg12[%c0_189, %c0_190, %c0_191], %720 {strides = array<i32>} : memref<8x8x32xf32, #tpu.memory_space<vmem>>, vector<1x8x32xf32>,
    %c0_192 = arith.constant 0 : index
    %c0_193 = arith.constant 0 : index
    %c0_194 = arith.constant 0 : index
    %721 = vector.load %arg11[%c0_192, %c0_193, %c0_194] : memref<8x8x32xf32, #tpu.memory_space<vmem>>, vector<8x8x32xf32>
    %722 = vector.shape_cast %721 : vector<8x8x32xf32> to vector<64x32xf32>
    %723 = arith.truncf %722 : vector<64x32xf32> to vector<64x32xbf16>
    %c0_195 = arith.constant 0 : index
    %c0_196 = arith.constant 0 : index
    %c0_197 = arith.constant 0 : index
    %724 = vector.load %arg12[%c0_195, %c0_196, %c0_197] : memref<8x8x32xf32, #tpu.memory_space<vmem>>, vector<8x8x32xf32>
    %725 = vector.shape_cast %724 : vector<8x8x32xf32> to vector<64x32xf32>
    %726 = arith.truncf %725 : vector<64x32xf32> to vector<64x32xbf16>
    %c0_198 = arith.constant 0 : index
    %c0_199 = arith.constant 0 : index
    %727 = vector.load %arg6[%c0_198, %c0_199] : memref<32x128xbf16, #tpu.memory_space<vmem>>, vector<32x128xbf16>
    %cst_200 = arith.constant dense<0.000000e+00> : vector<64x128xf32>
    %728 = tpu.matmul %723, %727, %cst_200 {dimension_numbers = #tpu.dot_dimension_numbers<[1], [0], [0], [1], [0, 0, 1, 1], [], []>} : vector<64x32xbf16>, vector<32x128xbf16>, vector<64x128xf32> -> vector<64x128xf32>
    %c0_201 = arith.constant 0 : index
    %c0_202 = arith.constant 0 : index
    %729 = vector.load %arg7[%c0_201, %c0_202] : memref<32x128xbf16, #tpu.memory_space<vmem>>, vector<32x128xbf16>
    %cst_203 = arith.constant dense<0.000000e+00> : vector<64x128xf32>
    %730 = tpu.matmul %726, %729, %cst_203 {dimension_numbers = #tpu.dot_dimension_numbers<[1], [0], [0], [1], [0, 0, 1, 1], [], []>} : vector<64x32xbf16>, vector<32x128xbf16>, vector<64x128xf32> -> vector<64x128xf32>
    %731 = arith.addf %728, %730 : vector<64x128xf32>
    %c0_204 = arith.constant 0 : index
    %c0_205 = arith.constant 0 : index
    %732 = vector.load %arg8[%c0_204, %c0_205] : memref<1x128xf32, #tpu.memory_space<vmem>>, vector<1x128xf32>
    %733 = vector.broadcast %732 : vector<1x128xf32> to vector<64x128xf32>
    %734 = arith.addf %731, %733 : vector<64x128xf32>
    %cst_206 = arith.constant dense<0xFF800000> : vector<64xf32>
    %735 = vector.multi_reduction <maximumf>, %734, %cst_206 [1] : vector<64x128xf32> to vector<64xf32>
    %736 = vector.shape_cast %735 : vector<64xf32> to vector<64x1xf32>
    %737 = vector.broadcast %736 : vector<64x1xf32> to vector<64x128xf32>
    %738 = arith.subf %734, %737 : vector<64x128xf32>
    %739 = math.exp %738 : vector<64x128xf32>
    %cst_207 = arith.constant dense<0.000000e+00> : vector<64xf32>
    %740 = vector.multi_reduction <add>, %739, %cst_207 [1] : vector<64x128xf32> to vector<64xf32>
    %741 = vector.shape_cast %740 : vector<64xf32> to vector<64x1xf32>
    %742 = math.log %741 : vector<64x1xf32>
    %743 = vector.broadcast %742 : vector<64x1xf32> to vector<64x128xf32>
    %744 = arith.subf %738, %743 : vector<64x128xf32>
    %745 = vector.shape_cast %744 : vector<64x128xf32> to vector<8x8x128xf32>
    %c0_208 = arith.constant 0 : index
    %c0_209 = arith.constant 0 : index
    %c0_210 = arith.constant 0 : index
    %746 = vector.load %arg9[%c0_208, %c0_209, %c0_210] : memref<8x8x128xf32, #tpu.memory_space<vmem>>, vector<8x8x128xf32>
    tpu.vector_store %arg9[%c0_208, %c0_209, %c0_210], %745 {strides = array<i32>} : memref<8x8x128xf32, #tpu.memory_space<vmem>>, vector<8x8x128xf32>,
    return
  }
}

</mosaic_0001>

<bundles_post_ra>
// kernel: tpu_custom_call.1
= control target key start
LH: loop header
LB: loop body
LE: loop exit
PB: predicated region body
PF: predicated region fallthrough
CT: control target
= control target key end

     0   :  { %14 = vsyncpa [#allocation6], 0  ;;  %s3390_s0 = inlined_call_operand.hbm [shape: bf16[8,8,32], index: 0, kind: input, shape index: {}]   ;;  %s3391_s1 = inlined_call_operand.vmem [shape: s32[8,1], index: 1, kind: input, shape index: {}]   ;;  %s3392_s2 = inlined_call_operand.hbm [shape: bf16[32,256], index: 2, kind: input, shape index: {}]   ;;  %s3393_s3 = inlined_call_operand.vmem [shape: bf16[32,128], index: 3, kind: input, shape index: {}]   ;;  %s3394_s4 = inlined_call_operand.hbm [shape: bf16[32,128], index: 4, kind: input, shape index: {}]   ;;  %s3395_s5 = inlined_call_operand.vmem [shape: f32[1,256], index: 5, kind: input, shape index: {}]   ;;  %s3396_s6 = inlined_call_operand.hbm [shape: bf16[32,128], index: 6, kind: input, shape index: {}]   ;;  %s3397_s7 = inlined_call_operand.vmem [shape: bf16[32,128], index: 7, kind: input, shape index: {}]   ;;  %s3398_s8 = inlined_call_operand.vmem [shape: f32[1,128], index: 8, kind: input, shape index: {}]   ;;  %s3399_s9 = inlined_call_operand.hbm [shape: f32[8,8,128], index: 9, kind: output, shape index: {}]  }
   0x1   :  { %15 = vsyncpa [#allocation9], 0 }
   0x2   :  { %16 = vsyncpa [#allocation12], 0 }
   0x3   :  { %17 = vsyncpa [#allocation7], 0  ;;  %s2566_s30 = smov [#allocation8]   ;;  %s2448_s13 = scalar_lea.hbm %s3392_s2, 512 }
   0x4   :  { %s37_s10 = sshll.u32 %s2566_s30, 4  ;;  %p2449_p0 = scmp.ne.s32.totalorder %s3392_s2, %s2448_s13  ;;  %s38_s10 = int_to_ptr.vmem [resolvable:$true] %s37_s10 }
   0x5   :  { %p2452_p1 = scmp.lt.u32.totalorder %s2448_s13, %s3392_s2 }
   0x7   :  { %p2454_p2 = pnand %p2452_p1, %p2449_p0 }
   0x9   :  { %2457 = shalt.err (!%p2454_p2)
}
   0xa   :  { %s2458_s18 = scalar_lea.vmem %s38_s10, 512  ;;  %p2463_p4 = scmp.lt.s32.totalorder %s38_s10, %s38_s10 }
   0xb   :  { %p2459_p3 = scmp.ne.s32.totalorder %s38_s10, %s2458_s18  ;;  %p2464_p5 = scmp.lt.s32.totalorder %s2458_s18, %s2458_s18 }
   0xd   :  { %p2465_p6 = por %p2464_p5, %p2463_p4 }
   0xf   :  { %p2466_p7 = pnand %p2465_p6, %p2459_p3 }
  0x11   :  { %2469 = shalt.err (!%p2466_p7)
}
  0x12   :  { %s2567_s19 = smov 128   ;;  %s2568_s20 = smov 8  }
  0x13   :  { %43 = dma.hbm_to_vmem [thread:$0]  %s3392_s2, 512, %s38_s10, [#allocation9], %s2567_s19, %s2567_s19, %s2568_s20  }
  0x14   :  { %s2569_s23 = smov [#allocation5]   ;;  %s2470_s27 = scalar_lea.hbm %s3390_s0, 512 }
  0x15   :  { %s23_s24 = sshll.u32 %s2569_s23, 4  ;;  %p2471_p8 = scmp.ne.s32.totalorder %s3390_s0, %s2470_s27  ;;  %s24_s24 = int_to_ptr.vmem [resolvable:$true] %s23_s24 }
  0x16   :  { %p2474_p9 = scmp.lt.u32.totalorder %s2470_s27, %s3390_s0 }
  0x18   :  { %p2476_p10 = pnand %p2474_p9, %p2471_p8 }
  0x1a   :  { %2479 = shalt.err (!%p2476_p10)
}
  0x1b   :  { %s2480_s12 = scalar_lea.vmem %s24_s24, 512  ;;  %p2485_p12 = scmp.lt.s32.totalorder %s24_s24, %s24_s24 }
  0x1c   :  { %p2481_p11 = scmp.ne.s32.totalorder %s24_s24, %s2480_s12  ;;  %p2486_p13 = scmp.lt.s32.totalorder %s2480_s12, %s2480_s12 }
  0x1e   :  { %p2487_p0 = por %p2486_p13, %p2485_p12 }
  0x20   :  { %p2488_p1 = pnand %p2487_p0, %p2481_p11 }
  0x22   :  { %2491 = shalt.err (!%p2488_p1)
}
  0x23   :  { %s2570_s2 = smov 64   ;;  %s2571_s10 = smov 4  }
  0x24   :  { %29 = dma.hbm_to_vmem [thread:$0]  %s3390_s0, 512, %s24_s24, [#allocation6], %s2570_s2, %s2570_s2, %s2571_s10  }
  0x25   :  { %s2572_s15 = smov [#allocation10]   ;;  %s2573_s17 = smov [#allocation11]  }
  0x26   :  { %s51_s16 = sshll.u32 %s2572_s15, 4  ;;  %s65_s18 = sshll.u32 %s2573_s17, 4  ;;  %s52_s16 = int_to_ptr.vmem [resolvable:$true] %s51_s16  ;;  %s2659_s18 = int_to_ptr.vmem [resolvable:$true] %s65_s18 }
  0x27   :  { %s2492_s23 = scalar_lea.hbm %s3394_s4, 256 }
  0x28   :  { %p2493_p2 = scmp.ne.s32.totalorder %s3394_s4, %s2492_s23  ;;  %p2496_p3 = scmp.lt.u32.totalorder %s2492_s23, %s3394_s4 }
  0x2a   :  { %p2498_p4 = pnand %p2496_p3, %p2493_p2 }
  0x2c   :  { %2501 = shalt.err (!%p2498_p4)
}
  0x2d   :  { %s2502_s0 = scalar_lea.vmem %s52_s16, 256  ;;  %p2507_p6 = scmp.lt.s32.totalorder %s52_s16, %s52_s16 }
  0x2e   :  { %p2503_p5 = scmp.ne.s32.totalorder %s52_s16, %s2502_s0  ;;  %p2508_p7 = scmp.lt.s32.totalorder %s2502_s0, %s2502_s0 }
  0x30   :  { %p2509_p8 = por %p2508_p7, %p2507_p6 }
  0x32   :  { %p2510_p9 = pnand %p2509_p8, %p2503_p5 }
  0x34   :  { %2513 = shalt.err (!%p2510_p9)
}
  0x35   :  { %57 = dma.hbm_to_vmem [thread:$0]  %s3394_s4, 256, %s52_s16, [#allocation9], %s2570_s2, %s2570_s2, %s2571_s10  }
  0x36   :  { %s2514_s12 = scalar_lea.hbm %s3396_s6, 256 }
  0x37   :  { %p2515_p10 = scmp.ne.s32.totalorder %s3396_s6, %s2514_s12  ;;  %p2518_p11 = scmp.lt.u32.totalorder %s2514_s12, %s3396_s6 }
  0x39   :  { %p2520_p12 = pnand %p2518_p11, %p2515_p10 }
  0x3b   :  { %2523 = shalt.err (!%p2520_p12)
}
  0x3c   :  { %s2524_s21 = scalar_lea.vmem %s2659_s18, 256  ;;  %p2529_p0 = scmp.lt.s32.totalorder %s2659_s18, %s2659_s18 }
  0x3d   :  { %p2525_p13 = scmp.ne.s32.totalorder %s2659_s18, %s2524_s21  ;;  %p2530_p1 = scmp.lt.s32.totalorder %s2524_s21, %s2524_s21 }
  0x3f   :  { %p2531_p2 = por %p2530_p1, %p2529_p0 }
  0x41   :  { %p2532_p3 = pnand %p2531_p2, %p2525_p13 }
  0x43   :  { %2535 = shalt.err (!%p2532_p3)
}
  0x44   :  { %71 = dma.hbm_to_vmem [thread:$0]  %s3396_s6, 256, %s2659_s18, [#allocation12], %s2570_s2, %s2570_s2, %s2571_s10  }
  0x45   :  { %2558 = dma.done.wait [#allocation6], 512  }
  0x46   :  { %2559 = vsyncadd [#allocation6], 4294966784 }
  0x47   :  { %2560 = dma.done.wait [#allocation9], 768  }
  0x48   :  { %2561 = vsyncadd [#allocation9], 4294966528 }
  0x49   :  { %2562 = dma.done.wait [#allocation12], 256  }
  0x4a   :  { %2563 = vsyncadd [#allocation12], 4294967040  ;;  %v2574_v0 = vmov 0   ;;  %v2266_v1 = vld [vmem:[#allocation8 + $0x4] ss:$8 sps:$4 sm:$0xff]   ;;  %v2272_v5 = vld [vmem:[#allocation5 + $0x10] sm:$0xff]   ;;  %v103_v13 = vlaneseq }
  0x4b   :  { %218 = vmatprep.mubr.bf16.mxu1 %v2574_v0  ;;  %198 = vmatprep.mubr.bf16.mxu0 %v2574_v0  ;;  %v2268_v2 = vld [vmem:[#allocation8] ss:$8 sps:$4 sm:$0xff]   ;;  %v2269_v3 = vld [vmem:[#allocation8 + $0x14] ss:$8 sps:$4 sm:$0xff]   ;;  %v2271_v4 = vld [vmem:[#allocation8 + $0x10] ss:$8 sps:$4 sm:$0xff]  }
  0x4c   :  { %2264 = vset.pattern.permute.xlu0 %v2574_v0  ;;  %2265 = vset.pattern.permute.xlu1 %v2574_v0  ;;  %v2703_v6 = vld [vmem:[%s3393_s3] sm:$0xff]   ;;  %vm153_vm0 = vcmask 261120   ;;  %v2575_v8 = vmov 0.0   ;;  %v2710_v9 = vld [vmem:[%s3393_s3 + $0x8] sm:$0xff]   ;;  %v2274_v10 = vld [vmem:[#allocation5 + $0x18] sm:$0xff]   ;;  %vm2576_vm1 = vmmov 0  }
  0x4d   :  { %2239 = vmatprep.subr.bf16.mxu1 %v2266_v1  ;;  %166 = vmatprep.subr.bf16.mxu0 %v2266_v1  ;;  %v2276_v7 = vld [vmem:[#allocation5] sm:$0xff]   ;;  %v2731_v12 = vld [vmem:[#allocation10 + $0x8] sm:$0xff]   ;;  %v104_v20 = vshrl.u32 %v103_v13, 7 }
  0x4e   :  { %2241 = vmatpush1.bf16.msra.mxu1 %v2268_v2  ;;  %167 = vmatpush1.bf16.msra.mxu0 %v2268_v2  ;;  %v2727_v11 = vld [vmem:[#allocation10] sm:$0xff]  }
  0x4f   :  { %2240 = vmatprep.subr.bf16.mxu1 %v2269_v3  ;;  %168 = vmatprep.subr.bf16.mxu0 %v2269_v3  ;;  %v105_v23 = vsub.s32 0, %v104_v20  ;;  %v101_v24 = vld [vmem:[%s3395_s5] sm:$0x3]  ;;  %v109_v32 = vsub.s32 1, %v104_v20 }
  0x50   :  { %v2778_v45 = vld [vmem:[%s3391_s1] sm:$0xff]  ;;  %s2577_s1 = smov 32  }
  0x51   :  { %v2768_v28 = vrot.slane %v101_v24, %v105_v23  ;;  %v2771_v37 = vrot.slane %v101_v24, %v109_v32  ;;  %vm264_vm2 = vcmp.gt.s32.totalorder %v2778_v45, 0  ;;  %vm265_vm3 = vcmp.gt.s32.totalorder %v2778_v45, 7 }
  0x52   :  { %2242 = vmatpush1.bf16.msra.mxu1 %v2271_v4  ;;  %169 = vmatpush1.bf16.msra.mxu0 %v2271_v4  ;;  %v347_v47 = vsel %vm264_vm2, 1, %v2574_v0  ;;  %v433_v4 = vsel %vm265_vm3, 1, %v2574_v0  ;;  %vm452_vm6 = vcmp.gt.s32.totalorder %v2778_v45, 6  ;;  %vm451_vm7 = vcmp.gt.s32.totalorder %v2778_v45, 1 }
  0x53   :  { %2087 = vmatprep.subr.bf16.mxu1 %v2575_v8  ;;  %2119 = vmatprep.subr.bf16.mxu0 %v2575_v8  ;;  %vm630_vm10 = vcmp.gt.s32.totalorder %v2778_v45, 5  ;;  %vm629_vm11 = vcmp.gt.s32.totalorder %v2778_v45, 2  ;;  %vm808_vm14 = vcmp.gt.s32.totalorder %v2778_v45, 4  ;;  %vm807_vm15 = vcmp.gt.s32.totalorder %v2778_v45, 3 }
  0x55   :  { %1978 = vmatmul.mubr.msk.bf16.vlgmr.msra.gmra.mrb[0].mxu1 %vm153_vm0, %v2272_v5  ;;  %1976 = vmatmul.mubr.msk.bf16.vlgmr.msra.gmra.mrb[0].mxu0 %vm153_vm0, %v2276_v7 }
  0x56   :  { %2088 = vmatpush3.bf16.msra.mxu1 %v2703_v6  ;;  %228 = vmatprep.mubr.bf16.mxu1 %v2574_v0 }
  0x57   :  { %2089 = vmatprep.subr.bf16.mxu1 %v2575_v8  ;;  %208 = vmatprep.mubr.bf16.mxu0 %v2574_v0 }
  0x58   :  { %2120 = vmatpush3.bf16.msra.mxu0 %v2703_v6 }
  0x59   :  { %2121 = vmatprep.subr.bf16.mxu0 %v2575_v8 }
  0x5a   :  { %2090 = vmatpush3.bf16.msra.mxu1 %v2710_v9 }
  0x5b   :  { %2095 = vmatprep.subr.bf16.mxu1 %v2575_v8 }
  0x5c   :  { %2122 = vmatpush3.bf16.msra.mxu0 %v2710_v9 }
  0x5d   :  { %1979 = vmatmul.mubr.msk.bf16.gmra.mrb[4].mxu1 %vm153_vm0, %v2274_v10  ;;  %2135 = vmatprep.subr.bf16.mxu0 %v2575_v8 }
  0x5e   :  { %2091 = vmatprep.mubr.msk.bf16.mxu1 %vm2576_vm1, %v2575_v8 }
  0x65   :  { %2092 = vmatmul.mubr.bf16.vlgmr.msra.gmra.mrb[8].mxu1 %v2574_v0 }
  0x66   :  { %2096 = vmatpush3.bf16.msra.mxu1 %v2727_v11  ;;  %2099 = vmatprep.mubr.msk.bf16.mxu1 %vm2576_vm1, %v2575_v8 }
  0x67   :  { %2097 = vmatprep.subr.bf16.mxu1 %v2575_v8 }
  0x6a   :  { %2098 = vmatpush3.bf16.msra.mxu1 %v2731_v12 }
  0x6b   :  { %2103 = vmatprep.subr.bf16.mxu1 %v2575_v8 }
  0x6d   :  { %2100 = vmatmul.mubr.bf16.vlgmr.msra.gmra.mrb[12].mxu1 %v2574_v0 }
  0x6e   :  { %2104 = vmatpush3.bf16.msra.mxu1 %v2703_v6  ;;  %2107 = vmatprep.mubr.msk.bf16.mxu1 %vm2576_vm1, %v2575_v8 }
  0x6f   :  { %2105 = vmatprep.subr.bf16.mxu1 %v2575_v8 }
  0x72   :  { %2106 = vmatpush3.bf16.msra.mxu1 %v2710_v9 }
  0x73   :  { %2111 = vmatprep.subr.bf16.mxu1 %v2575_v8 }
 0x128   :  { %v2745_v14 = vpop.f32.mrb[0].mxu1  ;;  %v200_v15 = vpop.f32.mrb[0].mxu0 }
 0x129   :  { %v2747_v16 = vpop.f32.mrb[1].mxu1  ;;  %v2749_v17 = vpop.f32.mrb[1].mxu0  ;;  %v201_v30 = vadd.f32 %v200_v15, %v2768_v28 }
 0x12a   :  { %v2751_v18 = vpop.f32.mrb[2].mxu1  ;;  %v2753_v19 = vpop.f32.mrb[2].mxu0 }
 0x12b   :  { %v2755_v21 = vpop.f32.mrb[3].mxu1  ;;  %v2757_v22 = vpop.f32.mrb[3].mxu0 }
 0x130   :  { %v2762_v25 = vpop.f32.mrb[4].mxu1 }
 0x131   :  { %v2764_v26 = vpop.f32.mrb[5].mxu1 }
 0x132   :  { %v2766_v27 = vpop.f32.mrb[6].mxu1 }
 0x133   :  { %v236_v29 = vpop.f32.mrb[7].mxu1 }
 0x134   :  { %v237_v38 = vadd.f32 %v236_v29, %v2771_v37 }
 0x138   :  { %v316_v31 = vpop.f32.mrb[8].mxu1 }
 0x139   :  { %v322_v33 = vadd.f32 %v316_v31, %v201_v30  ;;  %v2093_v34 = vpop.f32.mrb[9].mxu1 }
 0x13a   :  { %v319_v35 = vpop.f32.mrb[10].mxu1  ;;  %v205_v34 = vadd.f32 %v2753_v19, %v2768_v28 }
 0x13b   :  { %v2094_v36 = vpop.f32.mrb[11].mxu1  ;;  %2284 = vtanh.f32 %v322_v33  ;;  %v1982_v48 = vmul.f32 -1.442695, %v322_v33 }
 0x140   :  { %v402_v39 = vpop.f32.mrb[12].mxu1 }
 0x141   :  { %v408_v40 = vadd.f32 %v402_v39, %v237_v38  ;;  %v2101_v41 = vpop.f32.mrb[13].mxu1 }
 0x142   :  { %v405_v42 = vpop.f32.mrb[14].mxu1 }
 0x143   :  { %2286 = vtanh.f32 %v408_v40  ;;  %v2102_v43 = vpop.f32.mrb[15].mxu1  ;;  %v1985_v49 = vmul.f32 -1.442695, %v408_v40  ;;  %v233_v42 = vadd.f32 %v2764_v26, %v2771_v37 }
 0x144   :  { %2288 = vpow2.f32 %v1982_v48 }
 0x145   :  { %v2285_v44 = vpop.eup %2284  ;;  %2290 = vpow2.f32 %v1985_v49 }
 0x146   :  { %332 = vrot.lane.b32.xlu0 %v2285_v44, %s2570_s2 }
 0x14d   :  { %v2287_v46 = vpop.eup %2286 }
 0x14e   :  { %418 = vrot.lane.b32.xlu0 %v2287_v46, %s2570_s2  ;;  %v2289_v50 = vpop.eup %2288 }
 0x14f   :  { %v326_v51 = vadd.f32 1.0, %v2289_v50  ;;  %v2291_v52 = vpop.eup %2290 }
 0x150   :  { %v412_v53 = vadd.f32 1.0, %v2291_v52 }
 0x151   :  { %2292 = vrcp.f32 %v326_v51 }
 0x152   :  { %349 = vperm.xlu0 %2264, %v347_v47   ;;  %2294 = vrcp.f32 %v412_v53 }
 0x15b   :  { %v2293_v54 = vpop.eup %2292 }
 0x15c   :  { %v2295_v57 = vpop.eup %2294  ;;  %v330_v60 = vmul.f32 0.0, %v2293_v54 }
 0x15d   :  { %v416_v63 = vmul.f32 0.0, %v2295_v57 }
 0x1b8   :  { %v333_v55 = vpop.permute.xlu0 %332 }
 0x1b9   :  { %v335_v56 = vmul.f32 %v2293_v54, %v333_v55 }
 0x1bb   :  { %337 = vrot.lane.b32.xlu1 %v335_v56, %s2577_s1 }
 0x1c0   :  { %v419_v58 = vpop.permute.xlu0 %418 }
 0x1c1   :  { %v421_v59 = vmul.f32 %v2295_v57, %v419_v58 }
 0x1c3   :  { %423 = vrot.lane.b32.xlu1 %v421_v59, %s2577_s1 }
 0x1d1   :  { %v2795_v7 = vpop.permute.xlu0 %349 }
 0x1d2   :  { %vm351_vm4 = vcmp.eq.s32.totalorder %v2795_v7, 1 }
 0x22d   :  { %v338_v61 = vpop.permute.xlu1 %337 }
 0x22e   :  { %v2785_v62 = vadd.f32 %v338_v61, %v330_v60  ;;  %v609_v60 = vsel %vm452_vm6, 1, %v2574_v0  ;;  %v527_v61 = vsel %vm451_vm7, 1, %v2574_v0 }
 0x230   :  { %2296 = vtanh.f32 %v2785_v62 }
 0x235   :  { %v424_v1 = vpop.permute.xlu1 %423 }
 0x236   :  { %v2788_v2 = vadd.f32 %v424_v1, %v416_v63 }
 0x238   :  { %2298 = vtanh.f32 %v2788_v2 }
 0x23a   :  { %v2297_v3 = vpop.eup %2296 }
 0x23b   :  { %343 = vrot.lane.b32.xlu1 %v2297_v3, %s2570_s2  ;;  %v2850_v3 = vsel %vm351_vm4, %v2785_v62, 0.0 }
 0x23f   :  { %435 = vperm.xlu1 %2265, %v433_v4  }
 0x242   :  { %v2299_v5 = vpop.eup %2298 }
 0x243   :  { %429 = vrot.lane.b32.xlu0 %v2299_v5, %s2570_s2 }
 0x2ad   :  { %v344_v10 = vpop.permute.xlu1 %343 }
 0x2ae   :  { %v346_v13 = vmul.f32 %v2293_v54, %v344_v10 }
 0x2b0   :  { %v2800_v15 = vsel %vm351_vm4, %v346_v13, 0.0 }
 0x2b1   :  { %v455_v20 = vpack.c.bf16 %v2800_v15, %v2800_v15 }
 0x2b3   :  { %457 = vrot.lane.b32.xlu1 %v455_v20, %s2577_s1 }
 0x2b5   :  { %v430_v23 = vpop.permute.xlu0 %429 }
 0x2b6   :  { %v432_v24 = vmul.f32 %v2295_v57, %v430_v23 }
 0x2be   :  { %v2805_v29 = vpop.permute.xlu1 %435 }
 0x2bf   :  { %vm437_vm5 = vcmp.eq.s32.totalorder %v2805_v29, 1 }
 0x2c0   :  { %v2810_v30 = vsel %vm437_vm5, %v432_v24, 0.0  ;;  %v2844_v63 = vsel %vm437_vm5, %v2788_v2, 0.0  ;;  %v2279_v2 = vld [vmem:[#allocation5 + $0x8] sm:$0xff]  }
 0x2c1   :  { %v537_v31 = vpack.c.bf16 %v2810_v30, %v2810_v30  ;;  %1977 = vmatmul.mubr.msk.bf16.gmra.mrb[4].mxu0 %vm153_vm0, %v2279_v2 }
 0x2c2   :  { %2123 = vmatprep.mubr.msk.bf16.mxu0 %vm2576_vm1, %v2575_v8 }
 0x2c3   :  { %539 = vrot.lane.b32.xlu0 %v537_v31, %s2577_s1 }
 0x325   :  { %v458_v32 = vpop.permute.xlu1 %457 }
 0x326   :  { %2108 = vmatmul.mubr.msk.bf16.vlgmr.msra.gmra.mrb[16].mxu1 %vm153_vm0, %v458_v32 }
 0x327   :  { %2112 = vmatpush3.bf16.msra.mxu1 %v2727_v11  ;;  %2115 = vmatprep.mubr.msk.bf16.mxu1 %vm2576_vm1, %v2575_v8 }
 0x328   :  { %2113 = vmatprep.subr.bf16.mxu1 %v2575_v8 }
 0x32b   :  { %2114 = vmatpush3.bf16.msra.mxu1 %v2731_v12 }
 0x32c   :  { %2127 = vmatprep.subr.bf16.mxu1 %v2575_v8 }
 0x335   :  { %v540_v33 = vpop.permute.xlu0 %539 }
 0x336   :  { %2116 = vmatmul.mubr.msk.bf16.vlgmr.msra.gmra.mrb[20].mxu1 %vm153_vm0, %v540_v33 }
 0x337   :  { %2128 = vmatpush3.bf16.msra.mxu1 %v2727_v11  ;;  %2131 = vmatprep.mubr.msk.bf16.mxu1 %vm2576_vm1, %v2575_v8 }
 0x338   :  { %2129 = vmatprep.subr.bf16.mxu1 %v2575_v8 }
 0x33b   :  { %2130 = vmatpush3.bf16.msra.mxu1 %v2731_v12 }
 0x33c   :  { %2143 = vmatprep.subr.bf16.mxu1 %v2575_v8 }
 0x3f9   :  { %v496_v35 = vpop.f32.mrb[16].mxu1 }
 0x3fa   :  { %v502_v36 = vadd.f32 %v496_v35, %v205_v34  ;;  %v2109_v38 = vpop.f32.mrb[17].mxu1 }
 0x3fb   :  { %v499_v39 = vpop.f32.mrb[18].mxu1 }
 0x3fc   :  { %2300 = vtanh.f32 %v502_v36  ;;  %v2110_v40 = vpop.f32.mrb[19].mxu1  ;;  %v1987_v19 = vmul.f32 -1.442695, %v502_v36 }
 0x406   :  { %v2301_v41 = vpop.eup %2300 }
 0x407   :  { %512 = vrot.lane.b32.xlu0 %v2301_v41, %s2570_s2  ;;  %v210_v41 = vpop.f32.mrb[4].mxu0 }
 0x409   :  { %v578_v43 = vpop.f32.mrb[20].mxu1 }
 0x40a   :  { %v584_v44 = vadd.f32 %v578_v43, %v233_v42  ;;  %v2117_v46 = vpop.f32.mrb[21].mxu1 }
 0x40b   :  { %v581_v47 = vpop.f32.mrb[22].mxu1 }
 0x40c   :  { %2302 = vtanh.f32 %v584_v44  ;;  %v2118_v48 = vpop.f32.mrb[23].mxu1  ;;  %v1989_v51 = vmul.f32 -1.442695, %v584_v44  ;;  %v2906_v44 = vpop.f32.mrb[5].mxu0 }
 0x40d   :  { %2304 = vpow2.f32 %v1987_v19  ;;  %v2908_v46 = vpop.f32.mrb[6].mxu0  ;;  %v227_v48 = vadd.f32 %v2755_v21, %v2771_v37  ;;  %v211_v19 = vadd.f32 %v210_v41, %v2768_v28 }
 0x40e   :  { %2306 = vpow2.f32 %v1989_v51  ;;  %v2910_v47 = vpop.f32.mrb[7].mxu0 }
 0x416   :  { %v2303_v49 = vpop.eup %2302 }
 0x417   :  { %594 = vrot.lane.b32.xlu1 %v2303_v49, %s2570_s2  ;;  %v2305_v50 = vpop.eup %2304 }
 0x418   :  { %v506_v52 = vadd.f32 1.0, %v2305_v50  ;;  %v2307_v53 = vpop.eup %2306 }
 0x419   :  { %v588_v56 = vadd.f32 1.0, %v2307_v53 }
 0x41a   :  { %2308 = vrcp.f32 %v506_v52 }
 0x41b   :  { %2310 = vrcp.f32 %v588_v56 }
 0x424   :  { %v2309_v54 = vpop.eup %2308 }
 0x425   :  { %v2311_v57 = vpop.eup %2310  ;;  %v510_v10 = vmul.f32 %v2309_v54, %v2850_v3 }
 0x426   :  { %v592_v1 = vmul.f32 %v2311_v57, %v2844_v63 }
 0x479   :  { %v513_v55 = vpop.permute.xlu0 %512 }
 0x47a   :  { %v515_v26 = vmul.f32 %v2309_v54, %v513_v55 }
 0x47c   :  { %517 = vrot.lane.b32.xlu0 %v515_v26, %s2577_s1 }
 0x489   :  { %v595_v58 = vpop.permute.xlu1 %594 }
 0x48a   :  { %v597_v59 = vmul.f32 %v2311_v57, %v595_v58 }
 0x48c   :  { %599 = vrot.lane.b32.xlu1 %v597_v59, %s2577_s1 }
 0x490   :  { %611 = vperm.xlu1 %2265, %v609_v60  }
 0x494   :  { %529 = vperm.xlu1 %2265, %v527_v61  }
 0x4ee   :  { %v518_v4 = vpop.permute.xlu0 %517 }
 0x4ef   :  { %v2855_v20 = vadd.f32 %v518_v4, %v510_v10 }
 0x4fe   :  { %v600_v5 = vpop.permute.xlu1 %599 }
 0x4ff   :  { %v2853_v13 = vadd.f32 %v600_v5, %v592_v1 }
 0x501   :  { %2312 = vtanh.f32 %v2853_v13 }
 0x502   :  { %2314 = vtanh.f32 %v2855_v20 }
 0x50b   :  { %v2313_v23 = vpop.eup %2312 }
 0x50c   :  { %605 = vrot.lane.b32.xlu0 %v2313_v23, %s2570_s2  ;;  %v2315_v62 = vpop.eup %2314 }
 0x50f   :  { %v2864_v24 = vpop.permute.xlu1 %611 }
 0x510   :  { %523 = vrot.lane.b32.xlu0 %v2315_v62, %s2570_s2  ;;  %vm613_vm8 = vcmp.eq.s32.totalorder %v2864_v24, 1 }
 0x511   :  { %v2927_v41 = vsel %vm613_vm8, %v2853_v13, %v2844_v63 }
 0x513   :  { %v2869_v33 = vpop.permute.xlu1 %529 }
 0x514   :  { %vm531_vm9 = vcmp.eq.s32.totalorder %v2869_v33, 1 }
 0x57e   :  { %v606_v31 = vpop.permute.xlu0 %605 }
 0x57f   :  { %v2866_v32 = vmul.f32 %v2311_v57, %v606_v31 }
 0x581   :  { %v2875_v34 = vsel %vm613_vm8, %v2866_v32, %v2810_v30 }
 0x582   :  { %v524_v35 = vpop.permute.xlu0 %523  ;;  %v715_v36 = vpack.c.bf16 %v2875_v34, %v2875_v34 }
 0x583   :  { %v2879_v38 = vmul.f32 %v2309_v54, %v524_v35  ;;  %v787_v35 = vsel %vm630_vm10, 1, %v2574_v0 }
 0x584   :  { %717 = vrot.lane.b32.xlu1 %v715_v36, %s2577_s1 }
 0x585   :  { %v2887_v39 = vsel %vm531_vm9, %v2879_v38, %v2800_v15 }
 0x586   :  { %v633_v40 = vpack.c.bf16 %v2887_v39, %v2887_v39 }
 0x588   :  { %635 = vrot.lane.b32.xlu0 %v633_v40, %s2577_s1  ;;  %v705_v40 = vsel %vm629_vm11, 1, %v2574_v0 }
 0x5f6   :  { %v718_v42 = vpop.permute.xlu1 %717 }
 0x5f7   :  { %2132 = vmatmul.mubr.msk.bf16.vlgmr.msra.gmra.mrb[24].mxu1 %vm153_vm0, %v718_v42 }
 0x5f8   :  { %2144 = vmatpush3.bf16.msra.mxu1 %v2727_v11  ;;  %2147 = vmatprep.mubr.msk.bf16.mxu1 %vm2576_vm1, %v2575_v8 }
 0x5f9   :  { %2145 = vmatprep.subr.bf16.mxu1 %v2575_v8 }
 0x5fa   :  { %v636_v43 = vpop.permute.xlu0 %635 }
 0x5fb   :  { %2124 = vmatmul.mubr.msk.bf16.vlgmr.msra.gmra.mrb[8].mxu0 %vm153_vm0, %v636_v43 }
 0x5fc   :  { %2136 = vmatpush3.bf16.msra.mxu0 %v2703_v6  ;;  %2146 = vmatpush3.bf16.msra.mxu1 %v2731_v12 }
 0x5fd   :  { %2137 = vmatprep.subr.bf16.mxu0 %v2575_v8  ;;  %2139 = vmatprep.mubr.msk.bf16.mxu0 %vm2576_vm1, %v2575_v8 }
 0x5fe   :  { %2159 = vmatprep.subr.bf16.mxu1 %v2575_v8 }
 0x600   :  { %2138 = vmatpush3.bf16.msra.mxu0 %v2710_v9 }
 0x601   :  { %2151 = vmatprep.subr.bf16.mxu0 %v2575_v8 }
 0x6ca   :  { %v756_v49 = vpop.f32.mrb[24].mxu1 }
 0x6cb   :  { %v762_v50 = vadd.f32 %v756_v49, %v227_v48  ;;  %v2133_v51 = vpop.f32.mrb[25].mxu1  ;;  %v2936_v49 = vsel %vm531_vm9, %v2855_v20, %v2850_v3 }
 0x6cc   :  { %v759_v52 = vpop.f32.mrb[26].mxu1 }
 0x6cd   :  { %2316 = vtanh.f32 %v762_v50  ;;  %v2134_v53 = vpop.f32.mrb[27].mxu1  ;;  %v1993_v21 = vmul.f32 -1.442695, %v762_v50 }
 0x6ce   :  { %v674_v54 = vpop.f32.mrb[8].mxu0 }
 0x6cf   :  { %v680_v55 = vadd.f32 %v674_v54, %v211_v19  ;;  %v2125_v26 = vpop.f32.mrb[9].mxu0 }
 0x6d0   :  { %v677_v56 = vpop.f32.mrb[10].mxu0 }
 0x6d1   :  { %2318 = vtanh.f32 %v680_v55  ;;  %v2126_v57 = vpop.f32.mrb[11].mxu0  ;;  %v1991_v60 = vmul.f32 -1.442695, %v680_v55 }
 0x6d2   :  { %2320 = vpow2.f32 %v1993_v21 }
 0x6d3   :  { %2322 = vpow2.f32 %v1991_v60 }
 0x6d7   :  { %v2317_v58 = vpop.eup %2316 }
 0x6d8   :  { %772 = vrot.lane.b32.xlu1 %v2317_v58, %s2570_s2 }
 0x6db   :  { %v2319_v59 = vpop.eup %2318 }
 0x6dc   :  { %690 = vrot.lane.b32.xlu0 %v2319_v59, %s2570_s2  ;;  %v2321_v61 = vpop.eup %2320 }
 0x6dd   :  { %v766_v1 = vadd.f32 1.0, %v2321_v61  ;;  %v2323_v4 = vpop.eup %2322 }
 0x6de   :  { %v684_v5 = vadd.f32 1.0, %v2323_v4  ;;  %v215_v4 = vadd.f32 %v2908_v46, %v2768_v28 }
 0x6df   :  { %2324 = vrcp.f32 %v766_v1 }
 0x6e0   :  { %2326 = vrcp.f32 %v684_v5 }
 0x6e9   :  { %v2325_v10 = vpop.eup %2324 }
 0x6ea   :  { %v2327_v62 = vpop.eup %2326  ;;  %v770_v42 = vmul.f32 %v2325_v10, %v2927_v41 }
 0x6eb   :  { %v688_v19 = vmul.f32 %v2327_v62, %v2936_v49 }
 0x74a   :  { %v773_v2 = vpop.permute.xlu1 %772 }
 0x74b   :  { %v775_v23 = vmul.f32 %v2325_v10, %v773_v2 }
 0x74d   :  { %777 = vrot.lane.b32.xlu1 %v775_v23, %s2577_s1 }
 0x74e   :  { %v691_v31 = vpop.permute.xlu0 %690 }
 0x74f   :  { %v693_v36 = vmul.f32 %v2327_v62, %v691_v31 }
 0x751   :  { %695 = vrot.lane.b32.xlu0 %v693_v36, %s2577_s1  ;;  %789 = vperm.xlu1 %2265, %v787_v35  }
 0x755   :  { %707 = vperm.xlu1 %2265, %v705_v40  }
 0x7bf   :  { %v778_v43 = vpop.permute.xlu1 %777 }
 0x7c0   :  { %v2930_v48 = vadd.f32 %v778_v43, %v770_v42 }
 0x7c2   :  { %2328 = vtanh.f32 %v2930_v48 }
 0x7c3   :  { %v696_v50 = vpop.permute.xlu0 %695 }
 0x7c4   :  { %v2940_v51 = vadd.f32 %v696_v50, %v688_v19 }
 0x7c6   :  { %2330 = vtanh.f32 %v2940_v51 }
 0x7cc   :  { %v2329_v63 = vpop.eup %2328 }
 0x7cd   :  { %783 = vrot.lane.b32.xlu0 %v2329_v63, %s2570_s2 }
 0x7d0   :  { %v2331_v13 = vpop.eup %2330  ;;  %v2945_v52 = vpop.permute.xlu1 %789 }
 0x7d1   :  { %701 = vrot.lane.b32.xlu0 %v2331_v13, %s2570_s2  ;;  %vm791_vm12 = vcmp.eq.s32.totalorder %v2945_v52, 1 }
 0x7d4   :  { %v2950_v20 = vpop.permute.xlu1 %707 }
 0x7d5   :  { %vm709_vm13 = vcmp.eq.s32.totalorder %v2950_v20, 1  ;;  %v616_v20 = vsel %vm613_vm8, %v2866_v32, 0.0 }
 0x7d6   :  { %v3012_v45 = vsel %vm709_vm13, %v2940_v51, %v2936_v49 }
 0x83f   :  { %v784_v53 = vpop.permute.xlu0 %783 }
 0x840   :  { %v2947_v3 = vmul.f32 %v2325_v10, %v784_v53 }
 0x842   :  { %v2956_v54 = vsel %vm791_vm12, %v2947_v3, %v2875_v34 }
 0x843   :  { %v702_v55 = vpop.permute.xlu0 %701  ;;  %v893_v26 = vpack.c.bf16 %v2956_v54, %v2956_v54 }
 0x844   :  { %v2960_v56 = vmul.f32 %v2327_v62, %v702_v55 }
 0x845   :  { %895 = vrot.lane.b32.xlu1 %v893_v26, %s2577_s1  ;;  %v965_v26 = vsel %vm808_vm14, 1, %v2574_v0 }
 0x846   :  { %v2968_v57 = vsel %vm709_vm13, %v2960_v56, %v2887_v39  ;;  %v223_v39 = vadd.f32 %v2747_v16, %v2771_v37 }
 0x847   :  { %v811_v34 = vpack.c.bf16 %v2968_v57, %v2968_v57 }
 0x849   :  { %813 = vrot.lane.b32.xlu0 %v811_v34, %s2577_s1 }
 0x8b7   :  { %v896_v58 = vpop.permute.xlu1 %895 }
 0x8b8   :  { %2148 = vmatmul.mubr.msk.bf16.vlgmr.msra.gmra.mrb[28].mxu1 %vm153_vm0, %v896_v58  ;;  %v883_v58 = vsel %vm807_vm15, 1, %v2574_v0 }
 0x8b9   :  { %2160 = vmatpush3.bf16.msra.mxu1 %v2727_v11  ;;  %2163 = vmatprep.mubr.msk.bf16.mxu1 %vm2576_vm1, %v2575_v8 }
 0x8ba   :  { %2161 = vmatprep.subr.bf16.mxu1 %v2575_v8 }
 0x8bb   :  { %v814_v59 = vpop.permute.xlu0 %813 }
 0x8bc   :  { %2140 = vmatmul.mubr.msk.bf16.vlgmr.msra.gmra.mrb[12].mxu0 %vm153_vm0, %v814_v59  ;;  %v3003_v59 = vsel %vm791_vm12, %v2930_v48, %v2927_v41 }
 0x8bd   :  { %2152 = vmatpush3.bf16.msra.mxu0 %v2703_v6  ;;  %2162 = vmatpush3.bf16.msra.mxu1 %v2731_v12 }
 0x8be   :  { %2153 = vmatprep.subr.bf16.mxu0 %v2575_v8  ;;  %2155 = vmatprep.mubr.msk.bf16.mxu0 %vm2576_vm1, %v2575_v8 }
 0x8bf   :  { %2175 = vmatprep.subr.bf16.mxu1 %v2575_v8 }
 0x8c1   :  { %2154 = vmatpush3.bf16.msra.mxu0 %v2710_v9 }
 0x8c2   :  { %2167 = vmatprep.subr.bf16.mxu0 %v2575_v8 }
 0x98b   :  { %v934_v21 = vpop.f32.mrb[28].mxu1 }
 0x98c   :  { %v940_v60 = vadd.f32 %v934_v21, %v223_v39  ;;  %v2149_v61 = vpop.f32.mrb[29].mxu1 }
 0x98d   :  { %v937_v1 = vpop.f32.mrb[30].mxu1 }
 0x98e   :  { %2332 = vtanh.f32 %v940_v60  ;;  %v2150_v5 = vpop.f32.mrb[31].mxu1  ;;  %v1997_v16 = vmul.f32 -1.442695, %v940_v60 }
 0x98f   :  { %v852_v10 = vpop.f32.mrb[12].mxu0 }
 0x990   :  { %v858_v2 = vadd.f32 %v852_v10, %v215_v4  ;;  %v2141_v23 = vpop.f32.mrb[13].mxu0 }
 0x991   :  { %v855_v62 = vpop.f32.mrb[14].mxu0 }
 0x992   :  { %2334 = vtanh.f32 %v858_v2  ;;  %v2142_v31 = vpop.f32.mrb[15].mxu0  ;;  %v1995_v40 = vmul.f32 -1.442695, %v858_v2 }
 0x993   :  { %2336 = vpow2.f32 %v1997_v16 }
 0x994   :  { %2338 = vpow2.f32 %v1995_v40 }
 0x998   :  { %v2333_v35 = vpop.eup %2332 }
 0x999   :  { %950 = vrot.lane.b32.xlu1 %v2333_v35, %s2570_s2 }
 0x99c   :  { %v2335_v36 = vpop.eup %2334 }
 0x99d   :  { %868 = vrot.lane.b32.xlu0 %v2335_v36, %s2570_s2  ;;  %v2337_v42 = vpop.eup %2336 }
 0x99e   :  { %v944_v46 = vadd.f32 1.0, %v2337_v42  ;;  %v2339_v43 = vpop.eup %2338 }
 0x99f   :  { %v862_v19 = vadd.f32 1.0, %v2339_v43  ;;  %v221_v43 = vadd.f32 %v2745_v14, %v2768_v28 }
 0x9a0   :  { %2340 = vrcp.f32 %v944_v46 }
 0x9a1   :  { %2342 = vrcp.f32 %v862_v19 }
 0x9aa   :  { %v2341_v50 = vpop.eup %2340 }
 0x9ab   :  { %v2343_v53 = vpop.eup %2342  ;;  %v948_v39 = vmul.f32 %v2341_v50, %v3003_v59 }
 0x9ac   :  { %v866_v0 = vmul.f32 %v2343_v53, %v3012_v45 }
 0xa0b   :  { %v951_v63 = vpop.permute.xlu1 %950 }
 0xa0c   :  { %v953_v13 = vmul.f32 %v2341_v50, %v951_v63 }
 0xa0e   :  { %955 = vrot.lane.b32.xlu1 %v953_v13, %s2577_s1 }
 0xa0f   :  { %v869_v55 = vpop.permute.xlu0 %868 }
 0xa10   :  { %v871_v34 = vmul.f32 %v2343_v53, %v869_v55 }
 0xa12   :  { %873 = vrot.lane.b32.xlu0 %v871_v34, %s2577_s1  ;;  %967 = vperm.xlu1 %2265, %v965_v26  }
 0xa16   :  { %885 = vperm.xlu1 %2265, %v883_v58  }
 0xa80   :  { %v956_v21 = vpop.permute.xlu1 %955 }
 0xa81   :  { %v3006_v60 = vadd.f32 %v956_v21, %v948_v39 }
 0xa83   :  { %2344 = vtanh.f32 %v3006_v60 }
 0xa84   :  { %v874_v61 = vpop.permute.xlu0 %873 }
 0xa85   :  { %v3016_v1 = vadd.f32 %v874_v61, %v866_v0 }
 0xa87   :  { %2346 = vtanh.f32 %v3016_v1 }
 0xa8d   :  { %v2345_v41 = vpop.eup %2344 }
 0xa8e   :  { %961 = vrot.lane.b32.xlu0 %v2345_v41, %s2570_s2 }
 0xa91   :  { %v2347_v48 = vpop.eup %2346  ;;  %v3021_v4 = vpop.permute.xlu1 %967 }
 0xa92   :  { %879 = vrot.lane.b32.xlu0 %v2347_v48, %s2570_s2  ;;  %vm969_vm2 = vcmp.eq.s32.totalorder %v3021_v4, 1 }
 0xa95   :  { %v3026_v51 = vpop.permute.xlu1 %885 }
 0xa96   :  { %vm887_vm3 = vcmp.eq.s32.totalorder %v3026_v51, 1 }
 0xb00   :  { %v962_v5 = vpop.permute.xlu0 %961 }
 0xb01   :  { %v3023_v49 = vmul.f32 %v2341_v50, %v962_v5 }
 0xb03   :  { %v3032_v10 = vsel %vm969_vm2, %v3023_v49, %v2956_v54  ;;  %v972_v7 = vsel %vm969_vm2, %v3023_v49, 0.0 }
 0xb04   :  { %v880_v2 = vpop.permute.xlu0 %879  ;;  %v1062_v23 = vpack.c.bf16 %v3032_v10, %v3032_v10 }
 0xb05   :  { %v3036_v62 = vmul.f32 %v2343_v53, %v880_v2 }
 0xb06   :  { %1064 = vrot.lane.b32.xlu1 %v1062_v23, %s2577_s1 }
 0xb07   :  { %v3044_v31 = vsel %vm887_vm3, %v3036_v62, %v2968_v57  ;;  %v217_v57 = vadd.f32 %v2910_v47, %v2771_v37  ;;  %v890_v49 = vsel %vm887_vm3, %v3036_v62, 0.0 }
 0xb08   :  { %v986_v54 = vpack.c.bf16 %v3044_v31, %v3044_v31 }
 0xb0a   :  { %988 = vrot.lane.b32.xlu0 %v986_v54, %s2577_s1  ;;  %v3075_v54 = vsel %vm969_vm2, %v3006_v60, %v3003_v59 }
 0xb78   :  { %v1065_v35 = vpop.permute.xlu1 %1064 }
 0xb79   :  { %2164 = vmatmul.mubr.msk.bf16.vlgmr.msra.gmra.mrb[32].mxu1 %vm153_vm0, %v1065_v35 }
 0xb7a   :  { %2176 = vmatpush3.bf16.msra.mxu1 %v2727_v11  ;;  %2179 = vmatprep.mubr.msk.bf16.mxu1 %vm2576_vm1, %v2575_v8 }
 0xb7b   :  { %2177 = vmatprep.subr.bf16.mxu1 %v2575_v8 }
 0xb7c   :  { %v989_v36 = vpop.permute.xlu0 %988 }
 0xb7d   :  { %2156 = vmatmul.mubr.msk.bf16.vlgmr.msra.gmra.mrb[16].mxu0 %vm153_vm0, %v989_v36 }
 0xb7e   :  { %2168 = vmatpush3.bf16.msra.mxu0 %v2703_v6  ;;  %2178 = vmatpush3.bf16.msra.mxu1 %v2731_v12 }
 0xb7f   :  { %2169 = vmatprep.subr.bf16.mxu0 %v2575_v8  ;;  %2171 = vmatprep.mubr.msk.bf16.mxu0 %vm2576_vm1, %v2575_v8 }
 0xb80   :  { %2191 = vmatprep.subr.bf16.mxu1 %v2575_v8 }
 0xb82   :  { %2170 = vmatpush3.bf16.msra.mxu0 %v2710_v9 }
 0xb83   :  { %2183 = vmatprep.subr.bf16.mxu0 %v2575_v8 }
 0xc4c   :  { %v1103_v16 = vpop.f32.mrb[32].mxu1 }
 0xc4d   :  { %v1109_v40 = vadd.f32 %v1103_v16, %v217_v57  ;;  %v2165_v42 = vpop.f32.mrb[33].mxu1  ;;  %v3084_v16 = vsel %vm887_vm3, %v3016_v1, %v3012_v45 }
 0xc4e   :  { %v1106_v46 = vpop.f32.mrb[34].mxu1 }
 0xc4f   :  { %2348 = vtanh.f32 %v1109_v40  ;;  %v2166_v19 = vpop.f32.mrb[35].mxu1  ;;  %v2001_v47 = vmul.f32 -1.442695, %v1109_v40 }
 0xc50   :  { %v1027_v50 = vpop.f32.mrb[16].mxu0 }
 0xc51   :  { %v1033_v63 = vadd.f32 %v1027_v50, %v221_v43  ;;  %v2157_v13 = vpop.f32.mrb[17].mxu0 }
 0xc52   :  { %v1030_v53 = vpop.f32.mrb[18].mxu0 }
 0xc53   :  { %2350 = vtanh.f32 %v1033_v63  ;;  %v2158_v55 = vpop.f32.mrb[19].mxu0  ;;  %v1999_v58 = vmul.f32 -1.442695, %v1033_v63 }
 0xc54   :  { %2352 = vpow2.f32 %v2001_v47 }
 0xc55   :  { %2354 = vpow2.f32 %v1999_v58 }
 0xc59   :  { %v2349_v26 = vpop.eup %2348 }
 0xc5a   :  { %1119 = vrot.lane.b32.xlu1 %v2349_v26, %s2570_s2 }
 0xc5d   :  { %v2351_v34 = vpop.eup %2350 }
 0xc5e   :  { %1043 = vrot.lane.b32.xlu0 %v2351_v34, %s2570_s2  ;;  %v2353_v39 = vpop.eup %2352 }
 0xc5f   :  { %v1113_v14 = vadd.f32 1.0, %v2353_v39  ;;  %v2355_v21 = vpop.eup %2354 }
 0xc60   :  { %v1037_v0 = vadd.f32 1.0, %v2355_v21 }
 0xc61   :  { %2356 = vrcp.f32 %v1113_v14 }
 0xc62   :  { %2358 = vrcp.f32 %v1037_v0 }
 0xc6b   :  { %v2357_v61 = vpop.eup %2356 }
 0xc6c   :  { %v2359_v5 = vpop.eup %2358  ;;  %v1117_v35 = vmul.f32 %v2357_v61, %v3075_v54 }
 0xc6d   :  { %v1041_v40 = vmul.f32 %v2359_v5, %v3084_v16 }
 0xccc   :  { %v1120_v41 = vpop.permute.xlu1 %1119 }
 0xccd   :  { %v1122_v48 = vmul.f32 %v2357_v61, %v1120_v41 }
 0xccf   :  { %1124 = vrot.lane.b32.xlu1 %v1122_v48, %s2577_s1 }
 0xcd0   :  { %v1044_v2 = vpop.permute.xlu0 %1043 }
 0xcd1   :  { %v1046_v23 = vmul.f32 %v2359_v5, %v1044_v2 }
 0xcd3   :  { %1048 = vrot.lane.b32.xlu0 %v1046_v23, %s2577_s1 }
 0xd41   :  { %v1125_v36 = vpop.permute.xlu1 %1124 }
 0xd42   :  { %v3078_v57 = vadd.f32 %v1125_v36, %v1117_v35 }
 0xd44   :  { %2360 = vtanh.f32 %v3078_v57 }
 0xd45   :  { %v1049_v42 = vpop.permute.xlu0 %1048 }
 0xd46   :  { %v3088_v46 = vadd.f32 %v1049_v42, %v1041_v40 }
 0xd48   :  { %2362 = vtanh.f32 %v3088_v46 }
 0xd4e   :  { %v2361_v59 = vpop.eup %2360 }
 0xd4f   :  { %1130 = vrot.lane.b32.xlu1 %v2361_v59, %s2570_s2 }
 0xd52   :  { %v2363_v60 = vpop.eup %2362 }
 0xd53   :  { %1054 = vrot.lane.b32.xlu0 %v2363_v60, %s2570_s2  ;;  %v3141_v60 = vsel %vm887_vm3, %v3078_v57, %v3075_v54 }
 0xdc1   :  { %v1131_v43 = vpop.permute.xlu1 %1130 }
 0xdc2   :  { %v3093_v19 = vmul.f32 %v2357_v61, %v1131_v43 }
 0xdc4   :  { %v3099_v45 = vsel %vm887_vm3, %v3093_v19, %v3032_v10 }
 0xdc5   :  { %v1055_v1 = vpop.permute.xlu0 %1054  ;;  %v1226_v50 = vpack.c.bf16 %v3099_v45, %v3099_v45 }
 0xdc6   :  { %v3103_v63 = vmul.f32 %v2359_v5, %v1055_v1 }
 0xdc7   :  { %1228 = vrot.lane.b32.xlu1 %v1226_v50, %s2577_s1 }
 0xdc8   :  { %v3110_v13 = vsel %vm969_vm2, %v3103_v63, %v3044_v31 }
 0xdc9   :  { %v1150_v53 = vpack.c.bf16 %v3110_v13, %v3110_v13 }
 0xdcb   :  { %1152 = vrot.lane.b32.xlu0 %v1150_v53, %s2577_s1  ;;  %v3150_v53 = vsel %vm969_vm2, %v3088_v46, %v3084_v16 }
 0xe39   :  { %v1229_v10 = vpop.permute.xlu1 %1228 }
 0xe3a   :  { %2180 = vmatmul.mubr.msk.bf16.vlgmr.msra.gmra.mrb[36].mxu1 %vm153_vm0, %v1229_v10 }
 0xe3b   :  { %2192 = vmatpush3.bf16.msra.mxu1 %v2727_v11  ;;  %2195 = vmatprep.mubr.msk.bf16.mxu1 %vm2576_vm1, %v2575_v8  ;;  %v213_v11 = vadd.f32 %v2906_v44, %v2771_v37 }
 0xe3c   :  { %2193 = vmatprep.subr.bf16.mxu1 %v2575_v8 }
 0xe3d   :  { %v1153_v55 = vpop.permute.xlu0 %1152 }
 0xe3e   :  { %2172 = vmatmul.mubr.msk.bf16.vlgmr.msra.gmra.mrb[20].mxu0 %vm153_vm0, %v1153_v55 }
 0xe3f   :  { %2184 = vmatpush3.bf16.msra.mxu0 %v2703_v6  ;;  %2194 = vmatpush3.bf16.msra.mxu1 %v2731_v12  ;;  %v225_v12 = vadd.f32 %v2751_v18, %v2768_v28 }
 0xe40   :  { %2185 = vmatprep.subr.bf16.mxu0 %v2575_v8  ;;  %2187 = vmatprep.mubr.msk.bf16.mxu0 %vm2576_vm1, %v2575_v8 }
 0xe41   :  { %2207 = vmatprep.subr.bf16.mxu1 %v2575_v8 }
 0xe43   :  { %2186 = vmatpush3.bf16.msra.mxu0 %v2710_v9 }
 0xe44   :  { %2199 = vmatprep.subr.bf16.mxu0 %v2575_v8 }
 0xf0d   :  { %v1267_v31 = vpop.f32.mrb[36].mxu1 }
 0xf0e   :  { %v1273_v26 = vadd.f32 %v1267_v31, %v213_v11  ;;  %v2181_v34 = vpop.f32.mrb[37].mxu1 }
 0xf0f   :  { %v1270_v6 = vpop.f32.mrb[38].mxu1 }
 0xf10   :  { %2364 = vtanh.f32 %v1273_v26  ;;  %v2182_v47 = vpop.f32.mrb[39].mxu1  ;;  %v2005_v44 = vmul.f32 -1.442695, %v1273_v26 }
 0xf11   :  { %v1191_v58 = vpop.f32.mrb[20].mxu0 }
 0xf12   :  { %v1197_v39 = vadd.f32 %v1191_v58, %v225_v12  ;;  %v2173_v14 = vpop.f32.mrb[21].mxu0  ;;  %v2444_v58 = vld [vmem:[#allocation10] sm:$0xff]  }
 0xf13   :  { %v1194_v21 = vpop.f32.mrb[22].mxu0  ;;  %v2446_v14 = vld [vmem:[#allocation10 + $0x8] sm:$0xff]  }
 0xf14   :  { %2366 = vtanh.f32 %v1197_v39  ;;  %v2174_v9 = vpop.f32.mrb[23].mxu0  ;;  %v2003_v41 = vmul.f32 -1.442695, %v1197_v39  ;;  %v2447_v21 = vld [vmem:[%s3393_s3 + $0x8] sm:$0xff]  }
 0xf15   :  { %2368 = vpow2.f32 %v2005_v44  ;;  %v207_v9 = vadd.f32 %v2757_v22, %v2771_v37 }
 0xf16   :  { %2370 = vpow2.f32 %v2003_v41 }
 0xf1a   :  { %v2365_v0 = vpop.eup %2364 }
 0xf1b   :  { %1283 = vrot.lane.b32.xlu1 %v2365_v0, %s2570_s2 }
 0xf1e   :  { %v2367_v61 = vpop.eup %2366 }
 0xf1f   :  { %1207 = vrot.lane.b32.xlu0 %v2367_v61, %s2570_s2  ;;  %v2369_v48 = vpop.eup %2368 }
 0xf20   :  { %v1277_v18 = vadd.f32 1.0, %v2369_v48  ;;  %v2371_v5 = vpop.eup %2370  ;;  %v231_v48 = vadd.f32 %v2762_v25, %v2768_v28 }
 0xf21   :  { %v1201_v2 = vadd.f32 1.0, %v2371_v5 }
 0xf22   :  { %2372 = vrcp.f32 %v1277_v18 }
 0xf23   :  { %2374 = vrcp.f32 %v1201_v2 }
 0xf2c   :  { %v2373_v23 = vpop.eup %2372 }
 0xf2d   :  { %v2375_v40 = vpop.eup %2374  ;;  %v1281_v43 = vmul.f32 %v2373_v23, %v3141_v60 }
 0xf2e   :  { %v1205_v10 = vmul.f32 %v2375_v40, %v3150_v53 }
 0xf8d   :  { %v1284_v35 = vpop.permute.xlu1 %1283 }
 0xf8e   :  { %v1286_v36 = vmul.f32 %v2373_v23, %v1284_v35 }
 0xf90   :  { %1288 = vrot.lane.b32.xlu1 %v1286_v36, %s2577_s1 }
 0xf91   :  { %v1208_v42 = vpop.permute.xlu0 %1207 }
 0xf92   :  { %v1210_v59 = vmul.f32 %v2375_v40, %v1208_v42 }
 0xf94   :  { %1212 = vrot.lane.b32.xlu0 %v1210_v59, %s2577_s1 }
0x1002   :  { %v1289_v1 = vpop.permute.xlu1 %1288 }
0x1003   :  { %v3144_v50 = vadd.f32 %v1289_v1, %v1281_v43 }
0x1005   :  { %2376 = vtanh.f32 %v3144_v50 }
0x1006   :  { %v1213_v55 = vpop.permute.xlu0 %1212 }
0x1007   :  { %v3154_v11 = vadd.f32 %v1213_v55, %v1205_v10 }
0x1009   :  { %2378 = vtanh.f32 %v3154_v11 }
0x100f   :  { %v2377_v54 = vpop.eup %2376 }
0x1010   :  { %1294 = vrot.lane.b32.xlu1 %v2377_v54, %s2570_s2 }
0x1013   :  { %v2379_v57 = vpop.eup %2378 }
0x1014   :  { %1218 = vrot.lane.b32.xlu0 %v2379_v57, %s2570_s2 }
0x1082   :  { %v1295_v31 = vpop.permute.xlu1 %1294 }
0x1083   :  { %v3159_v26 = vmul.f32 %v2373_v23, %v1295_v31 }
0x1085   :  { %v3165_v16 = vsel %vm709_vm13, %v3159_v26, %v3099_v45 }
0x1086   :  { %v1219_v46 = vpop.permute.xlu0 %1218  ;;  %v1390_v34 = vpack.c.bf16 %v3165_v16, %v3165_v16 }
0x1087   :  { %v3169_v6 = vmul.f32 %v2375_v40, %v1219_v46 }
0x1088   :  { %1392 = vrot.lane.b32.xlu1 %v1390_v34, %s2577_s1  ;;  %v3207_v34 = vsel %vm709_vm13, %v3144_v50, %v3141_v60 }
0x1089   :  { %v3176_v12 = vsel %vm791_vm12, %v3169_v6, %v3110_v13  ;;  %v2445_v13 = vld [vmem:[%s3393_s3] sm:$0xff]   ;;  %v1224_v33 = vsel %vm791_vm12, %v3169_v6, 0.0 }
0x108a   :  { %v1314_v47 = vpack.c.bf16 %v3176_v12, %v3176_v12 }
0x108c   :  { %1316 = vrot.lane.b32.xlu0 %v1314_v47, %s2577_s1 }
0x10fa   :  { %v1393_v45 = vpop.permute.xlu1 %1392 }
0x10fb   :  { %2196 = vmatmul.mubr.msk.bf16.vlgmr.msra.gmra.mrb[40].mxu1 %vm153_vm0, %v1393_v45 }
0x10fc   :  { %2208 = vmatpush3.bf16.msra.mxu1 %v2444_v58  ;;  %2211 = vmatprep.mubr.msk.bf16.mxu1 %vm2576_vm1, %v2575_v8 }
0x10fd   :  { %2209 = vmatprep.subr.bf16.mxu1 %v2575_v8 }
0x10fe   :  { %v1317_v39 = vpop.permute.xlu0 %1316 }
0x10ff   :  { %2188 = vmatmul.mubr.msk.bf16.vlgmr.msra.gmra.mrb[24].mxu0 %vm153_vm0, %v1317_v39  ;;  %v3214_v39 = vsel %vm791_vm12, %v3154_v11, %v3150_v53 }
0x1100   :  { %2200 = vmatpush3.bf16.msra.mxu0 %v2445_v13  ;;  %2210 = vmatpush3.bf16.msra.mxu1 %v2446_v14 }
0x1101   :  { %2201 = vmatprep.subr.bf16.mxu0 %v2575_v8  ;;  %2203 = vmatprep.mubr.msk.bf16.mxu0 %vm2576_vm1, %v2575_v8 }
0x1104   :  { %2202 = vmatpush3.bf16.msra.mxu0 %v2447_v21 }
0x11ce   :  { %v1431_v0 = vpop.f32.mrb[40].mxu1 }
0x11cf   :  { %v1437_v61 = vadd.f32 %v1431_v0, %v207_v9  ;;  %v2197_v44 = vpop.f32.mrb[41].mxu1 }
0x11d0   :  { %v1434_v41 = vpop.f32.mrb[42].mxu1 }
0x11d1   :  { %2380 = vtanh.f32 %v1437_v61  ;;  %v2198_v18 = vpop.f32.mrb[43].mxu1  ;;  %v2009_v22 = vmul.f32 -1.442695, %v1437_v61 }
0x11d2   :  { %v1355_v5 = vpop.f32.mrb[24].mxu0 }
0x11d3   :  { %v1361_v2 = vadd.f32 %v1355_v5, %v231_v48  ;;  %v2189_v8 = vpop.f32.mrb[25].mxu0 }
0x11d4   :  { %v1358_v23 = vpop.f32.mrb[26].mxu0 }
0x11d5   :  { %2382 = vtanh.f32 %v1361_v2  ;;  %v2190_v35 = vpop.f32.mrb[27].mxu0  ;;  %v2007_v42 = vmul.f32 -1.442695, %v1361_v2 }
0x11d6   :  { %2384 = vpow2.f32 %v2009_v22 }
0x11d7   :  { %2386 = vpow2.f32 %v2007_v42 }
0x11db   :  { %v2381_v36 = vpop.eup %2380 }
0x11dc   :  { %1447 = vrot.lane.b32.xlu1 %v2381_v36, %s2570_s2  ;;  %v235_v36 = vadd.f32 %v2766_v27, %v2768_v28 }
0x11df   :  { %v2383_v40 = vpop.eup %2382 }
0x11e0   :  { %1371 = vrot.lane.b32.xlu0 %v2383_v40, %s2570_s2  ;;  %v2385_v59 = vpop.eup %2384 }
0x11e1   :  { %v1441_v25 = vadd.f32 1.0, %v2385_v59  ;;  %v2387_v43 = vpop.eup %2386 }
0x11e2   :  { %v1365_v1 = vadd.f32 1.0, %v2387_v43 }
0x11e3   :  { %2388 = vrcp.f32 %v1441_v25 }
0x11e4   :  { %2390 = vrcp.f32 %v1365_v1 }
0x11ed   :  { %v2389_v10 = vpop.eup %2388 }
0x11ee   :  { %v2391_v57 = vpop.eup %2390  ;;  %v1445_v47 = vmul.f32 %v2389_v10, %v3207_v34 }
0x11ef   :  { %v1369_v13 = vmul.f32 %v2391_v57, %v3214_v39 }
0x124e   :  { %v1448_v55 = vpop.permute.xlu1 %1447 }
0x124f   :  { %v1450_v54 = vmul.f32 %v2389_v10, %v1448_v55 }
0x1251   :  { %1452 = vrot.lane.b32.xlu1 %v1450_v54, %s2577_s1 }
0x1252   :  { %v1372_v31 = vpop.permute.xlu0 %1371 }
0x1253   :  { %v1374_v46 = vmul.f32 %v2391_v57, %v1372_v31 }
0x1255   :  { %1376 = vrot.lane.b32.xlu0 %v1374_v46, %s2577_s1 }
0x12c3   :  { %v1453_v45 = vpop.permute.xlu1 %1452 }
0x12c4   :  { %v1455_v58 = vadd.f32 %v1453_v45, %v1445_v47 }
0x12c6   :  { %2392 = vtanh.f32 %v1455_v58 }
0x12c7   :  { %v1377_v14 = vpop.permute.xlu0 %1376 }
0x12c8   :  { %v1379_v21 = vadd.f32 %v1377_v14, %v1369_v13  ;;  %v1463_v13 = vsel %vm531_vm9, %v1455_v58, %v3207_v34  ;;  %v1136_v58 = vsel %vm887_vm3, %v3093_v19, 0.0  ;;  %v1060_v19 = vsel %vm969_vm2, %v3103_v63, 0.0 }
0x12ca   :  { %2394 = vtanh.f32 %v1379_v21 }
0x12d0   :  { %v2393_v9 = vpop.eup %2392 }
0x12d1   :  { %1458 = vrot.lane.b32.xlu1 %v2393_v9, %s2570_s2 }
0x12d4   :  { %v2395_v60 = vpop.eup %2394 }
0x12d5   :  { %1382 = vrot.lane.b32.xlu0 %v2395_v60, %s2570_s2 }
0x1343   :  { %v1459_v50 = vpop.permute.xlu1 %1458 }
0x1344   :  { %v1461_v0 = vmul.f32 %v2389_v10, %v1459_v50  ;;  %v1387_v50 = vsel %vm613_vm8, %v1379_v21, %v3214_v39  ;;  %v794_v39 = vsel %vm791_vm12, %v2947_v3, 0.0  ;;  %v712_v21 = vsel %vm709_vm13, %v2960_v56, 0.0 }
0x1346   :  { %v1462_v61 = vsel %vm531_vm9, %v1461_v0, %v3165_v16  ;;  %v203_v16 = vadd.f32 %v2749_v17, %v2771_v37  ;;  %v1464_v34 = vsel %vm531_vm9, %v1461_v0, 0.0 }
0x1347   :  { %v1383_v53 = vpop.permute.xlu0 %1382  ;;  %v1552_v11 = vpack.c.bf16 %v1462_v61, %v1462_v61 }
0x1348   :  { %v3222_v44 = vmul.f32 %v2391_v57, %v1383_v53 }
0x1349   :  { %1554 = vrot.lane.b32.xlu1 %v1552_v11, %s2577_s1 }
0x134a   :  { %v1386_v41 = vsel %vm613_vm8, %v3222_v44, %v3176_v12  ;;  %v1388_v3 = vsel %vm613_vm8, %v3222_v44, 0.0 }
0x134b   :  { %v1478_v48 = vpack.c.bf16 %v1386_v41, %v1386_v41 }
0x134d   :  { %1480 = vrot.lane.b32.xlu0 %v1478_v48, %s2577_s1 }
0x13bb   :  { %v1555_v18 = vpop.permute.xlu1 %1554 }
0x13bc   :  { %2212 = vmatmul.mubr.msk.bf16.vlgmr.msra.gmra.mrb[44].mxu1 %vm153_vm0, %v1555_v18  ;;  %v2282_v18 = vld [vmem:[#allocation11] sm:$0xff]  }
0x13bf   :  { %v1481_v5 = vpop.permute.xlu0 %1480 }
0x13c0   :  { %2204 = vmatmul.mubr.msk.bf16.vlgmr.msra.gmra.mrb[28].mxu0 %vm153_vm0, %v1481_v5  ;;  %v1300_v5 = vsel %vm709_vm13, %v3159_v26, 0.0 }
0x148f   :  { %v1593_v2 = vpop.f32.mrb[44].mxu1 }
0x1490   :  { %v1599_v8 = vadd.f32 %v1593_v2, %v203_v16  ;;  %v2213_v23 = vpop.f32.mrb[45].mxu1 }
0x1491   :  { %v1596_v35 = vpop.f32.mrb[46].mxu1 }
0x1492   :  { %2396 = vtanh.f32 %v1599_v8  ;;  %v2214_v12 = vpop.f32.mrb[47].mxu1  ;;  %v2013_v17 = vmul.f32 -1.442695, %v1599_v8  ;;  %v534_v8 = vsel %vm531_vm9, %v2879_v38, 0.0 }
0x1493   :  { %v1519_v40 = vpop.f32.mrb[28].mxu0 }
0x1494   :  { %v1525_v22 = vadd.f32 %v1519_v40, %v235_v36  ;;  %v2205_v42 = vpop.f32.mrb[29].mxu0 }
0x1495   :  { %v1522_v59 = vpop.f32.mrb[30].mxu0 }
0x1496   :  { %2398 = vtanh.f32 %v1525_v22  ;;  %v2206_v25 = vpop.f32.mrb[31].mxu0  ;;  %v2011_v37 = vmul.f32 -1.442695, %v1525_v22 }
0x1497   :  { %2400 = vpow2.f32 %v2013_v17  ;;  %v2283_v25 = vld [vmem:[#allocation11 + $0x8] sm:$0xff]  }
0x1498   :  { %2402 = vpow2.f32 %v2011_v37 }
0x149c   :  { %v2397_v43 = vpop.eup %2396 }
0x149d   :  { %1609 = vrot.lane.b32.xlu1 %v2397_v43, %s2570_s2 }
0x14a0   :  { %v2399_v1 = vpop.eup %2398 }
0x14a1   :  { %1535 = vrot.lane.b32.xlu0 %v2399_v1, %s2570_s2  ;;  %v2401_v10 = vpop.eup %2400 }
0x14a2   :  { %v1603_v27 = vadd.f32 1.0, %v2401_v10  ;;  %v2403_v28 = vpop.eup %2402 }
0x14a3   :  { %v1529_v55 = vadd.f32 1.0, %v2403_v28 }
0x14a4   :  { %2404 = vrcp.f32 %v1603_v27 }
0x14a5   :  { %2406 = vrcp.f32 %v1529_v55 }
0x14ae   :  { %v2405_v54 = vpop.eup %2404 }
0x14af   :  { %v3239_v46 = vpop.eup %2406  ;;  %v1607_v14 = vmul.f32 %v2405_v54, %v1463_v13 }
0x14b0   :  { %v1533_v61 = vmul.f32 %v3239_v46, %v1387_v50 }
0x150f   :  { %v1610_v57 = vpop.permute.xlu1 %1609 }
0x1510   :  { %v1612_v31 = vmul.f32 %v2405_v54, %v1610_v57 }
0x1512   :  { %1614 = vrot.lane.b32.xlu1 %v1612_v31, %s2577_s1 }
0x1513   :  { %v1536_v47 = vpop.permute.xlu0 %1535 }
0x1514   :  { %v1538_v45 = vmul.f32 %v3239_v46, %v1536_v47 }
0x1516   :  { %1540 = vrot.lane.b32.xlu0 %v1538_v45, %s2577_s1 }
0x1584   :  { %v1615_v9 = vpop.permute.xlu1 %1614 }
0x1585   :  { %v1617_v60 = vadd.f32 %v1615_v9, %v1607_v14 }
0x1587   :  { %2408 = vtanh.f32 %v1617_v60 }
0x1588   :  { %v1541_v53 = vpop.permute.xlu0 %1540 }
0x1589   :  { %v1543_v11 = vadd.f32 %v1541_v53, %v1533_v61 }
0x158b   :  { %2410 = vtanh.f32 %v1543_v11 }
0x1591   :  { %v2409_v41 = vpop.eup %2408 }
0x1592   :  { %1620 = vrot.lane.b32.xlu1 %v2409_v41, %s2570_s2  ;;  %v2026_v41 = vld [vmem:[%s3398_s8] ss:$0 sm:$0xff]  ;;  %s2578_s8 = smov [#allocation13]  }
0x1593   :  { %s1954_s12 = sshll.u32 %s2578_s8, 4  ;;  %s1955_s12 = int_to_ptr.vmem [resolvable:$true] %s1954_s12 }
0x1594   :  { %s2536_s13 = scalar_lea.vmem %s1955_s12, 1024  ;;  %p2541_p5 = scmp.lt.s32.totalorder %s1955_s12, %s1955_s12 }
0x1595   :  { %v2411_v48 = vpop.eup %2410  ;;  %p2537_p4 = scmp.ne.s32.totalorder %s1955_s12, %s2536_s13  ;;  %p2542_p6 = scmp.lt.s32.totalorder %s2536_s13, %s2536_s13 }
0x1596   :  { %1546 = vrot.lane.b32.xlu0 %v2411_v48, %s2570_s2  ;;  %1472 = vrot.lane.b32.xlu1 %v1464_v34, %s2577_s1 }
0x1597   :  { %p2543_p7 = por %p2542_p6, %p2541_p5 }
0x1599   :  { %p2544_p8 = pnand %p2543_p7, %p2537_p4 }
0x159a   :  { %1144 = vrot.lane.b32.xlu1 %v1136_v58, %s2577_s1 }
0x159e   :  { %802 = vrot.lane.b32.xlu1 %v794_v39, %s2577_s1 }
0x15a2   :  { %446 = vrot.lane.b32.xlu1 %v2810_v30, %s2577_s1  ;;  %v2281_v30 = vld [vmem:[%s3397_s7 + $0x8] sm:$0xff]  }
0x15a6   :  { %441 = vrot.lane.b32.xlu1 %v2800_v15, %s2577_s1  ;;  %v2280_v15 = vld [vmem:[%s3397_s7] sm:$0xff]  }
0x15a7   :  { %2215 = vmatprep.subr.bf16.mxu0 %v2280_v15 }
0x15a8   :  { %2216 = vmatpush3.bf16.msra.mxu0 %v2280_v15 }
0x15a9   :  { %2217 = vmatprep.subr.bf16.mxu0 %v2281_v30 }
0x15aa   :  { %796 = vrot.lane.b32.xlu1 %v712_v21, %s2577_s1 }
0x15ac   :  { %2218 = vmatpush3.bf16.msra.mxu0 %v2281_v30 }
0x15ad   :  { %2227 = vmatprep.subr.bf16.mxu0 %v2282_v18 }
0x15ae   :  { %1138 = vrot.lane.b32.xlu1 %v1060_v19, %s2577_s1 }
0x15b2   :  { %1466 = vrot.lane.b32.xlu1 %v1388_v3, %s2577_s1 }
0x1604   :  { %v1621_v56 = vpop.permute.xlu1 %1620 }
0x1605   :  { %v1623_v63 = vmul.f32 %v2405_v54, %v1621_v56 }
0x1607   :  { %v1624_v0 = vsel %vm351_vm4, %v1623_v63, 0.0 }
0x1608   :  { %1632 = vrot.lane.b32.xlu0 %v1624_v0, %s2577_s1  ;;  %v1473_v44 = vpop.permute.xlu1 %1472  ;;  %v1547_v24 = vpop.permute.xlu0 %1546 }
0x1609   :  { %1476 = vst.msk [vmem:[#allocation4 + $0x8] sm:$0xff] %vm153_vm0, %v1473_v44  ;;  %v1549_v23 = vmul.f32 %v3239_v46, %v1547_v24 }
0x160b   :  { %v1550_v51 = vsel %vm437_vm5, %v1549_v23, 0.0 }
0x160c   :  { %1308 = vrot.lane.b32.xlu0 %v1300_v5, %s2577_s1  ;;  %v1145_v16 = vpop.permute.xlu1 %1144 }
0x160d   :  { %1148 = vst.msk [vmem:[#allocation4 + $0x18] sm:$0xff] %vm153_vm0, %v1145_v16 }
0x1610   :  { %980 = vrot.lane.b32.xlu0 %v972_v7, %s2577_s1  ;;  %v803_v2 = vpop.permute.xlu1 %802  ;;  %v1649_v12 = vld [vmem:[#allocation4 + $0x8] sm:$0xff] }
0x1611   :  { %806 = vst.msk [vmem:[#allocation4 + $0x28] sm:$0xff] %vm153_vm0, %v803_v2 }
0x1614   :  { %624 = vrot.lane.b32.xlu0 %v616_v20, %s2577_s1  ;;  %v447_v26 = vpop.permute.xlu1 %446  ;;  %v1651_v42 = vld [vmem:[#allocation4 + $0x18] sm:$0xff] }
0x1615   :  { %450 = vst.msk [vmem:[#allocation4 + $0x38] sm:$0xff] %vm153_vm0, %v447_v26 }
0x1618   :  { %618 = vrot.lane.b32.xlu0 %v534_v8, %s2577_s1  ;;  %v442_v4 = vpop.permute.xlu1 %441  ;;  %v1653_v17 = vld [vmem:[#allocation4 + $0x28] sm:$0xff] }
0x1619   :  { %444 = vst.msk [vmem:[#allocation3] sm:$0xff] %vm153_vm0, %v442_v4 }
0x161c   :  { %974 = vrot.lane.b32.xlu0 %v890_v49, %s2577_s1  ;;  %v797_v32 = vpop.permute.xlu1 %796  ;;  %v1655_v28 = vld [vmem:[#allocation4 + $0x38] sm:$0xff] }
0x161d   :  { %800 = vst.msk [vmem:[#allocation3 + $0x10] sm:$0xff] %vm153_vm0, %v797_v32 }
0x1620   :  { %1302 = vrot.lane.b32.xlu0 %v1224_v33, %s2577_s1  ;;  %v1139_v38 = vpop.permute.xlu1 %1138  ;;  %v1636_v57 = vld [vmem:[#allocation3] sm:$0xff] }
0x1621   :  { %1142 = vst.msk [vmem:[#allocation3 + $0x20] sm:$0xff] %vm153_vm0, %v1139_v38 }
0x1624   :  { %1626 = vrot.lane.b32.xlu0 %v1550_v51, %s2577_s1  ;;  %v1467_v62 = vpop.permute.xlu1 %1466  ;;  %v1638_v45 = vld [vmem:[#allocation3 + $0x10] sm:$0xff] }
0x1625   :  { %1470 = vst.msk [vmem:[#allocation3 + $0x30] sm:$0xff] %vm153_vm0, %v1467_v62 }
0x1628   :  { %v1640_v9 = vld [vmem:[#allocation3 + $0x20] sm:$0xff] }
0x162c   :  { %v1642_v61 = vld [vmem:[#allocation3 + $0x30] sm:$0xff] }
0x167a   :  { %v1633_v35 = vpop.permute.xlu0 %1632 }
0x167b   :  { %1635 = vst.msk [vmem:[#allocation4] sm:$0xff] %vm153_vm0, %v1633_v35 }
0x167e   :  { %v1309_v36 = vpop.permute.xlu0 %1308 }
0x167f   :  { %1312 = vst.msk [vmem:[#allocation4 + $0x10] sm:$0xff] %vm153_vm0, %v1309_v36 }
0x1682   :  { %v981_v52 = vpop.permute.xlu0 %980  ;;  %v1648_v6 = vld [vmem:[#allocation4] sm:$0xff] }
0x1683   :  { %984 = vst.msk [vmem:[#allocation4 + $0x20] sm:$0xff] %vm153_vm0, %v981_v52  ;;  %v1656_v40 = vpack.c.bf16 %v1649_v12, %v1648_v6 }
0x1685   :  { %2219 = vmatprep.mubr.msk.bf16.mxu0 %vm153_vm0, %v1656_v40 }
0x1686   :  { %v625_v29 = vpop.permute.xlu0 %624  ;;  %v1650_v22 = vld [vmem:[#allocation4 + $0x10] sm:$0xff] }
0x1687   :  { %628 = vst.msk [vmem:[#allocation4 + $0x30] sm:$0xff] %vm153_vm0, %v625_v29  ;;  %v1657_v59 = vpack.c.bf16 %v1651_v42, %v1650_v22 }
0x1689   :  { %2220 = vmatmul.mubr.msk.bf16.vlgmr.msra.gmra.mrb[32].mxu0 %vm153_vm0, %v1657_v59 }
0x168a   :  { %v619_v43 = vpop.permute.xlu0 %618  ;;  %2228 = vmatpush3.bf16.msra.mxu0 %v2282_v18  ;;  %v1652_v1 = vld [vmem:[#allocation4 + $0x20] sm:$0xff] }
0x168b   :  { %622 = vst.msk [vmem:[#allocation3 + $0x8] sm:$0xff] %vm153_vm0, %v619_v43  ;;  %v1658_v37 = vpack.c.bf16 %v1653_v17, %v1652_v1  ;;  %2229 = vmatprep.subr.bf16.mxu0 %v2283_v25 }
0x168d   :  { %2223 = vmatprep.mubr.msk.bf16.mxu0 %vm153_vm0, %v1658_v37 }
0x168e   :  { %v975_v10 = vpop.permute.xlu0 %974  ;;  %v1654_v27 = vld [vmem:[#allocation4 + $0x30] sm:$0xff]  ;;  %2230 = vmatpush3.bf16.msra.mxu0 %v2283_v25 }
0x168f   :  { %978 = vst.msk [vmem:[#allocation3 + $0x18] sm:$0xff] %vm153_vm0, %v975_v10  ;;  %v1659_v55 = vpack.c.bf16 %v1655_v28, %v1654_v27 }
0x1691   :  { %2224 = vmatmul.mubr.msk.bf16.gmra.mrb[36].mxu0 %vm153_vm0, %v1659_v55 }
0x1692   :  { %v1303_v54 = vpop.permute.xlu0 %1302  ;;  %v1637_v31 = vld [vmem:[#allocation3 + $0x8] sm:$0xff] }
0x1693   :  { %1306 = vst.msk [vmem:[#allocation3 + $0x28] sm:$0xff] %vm153_vm0, %v1303_v54  ;;  %v1644_v46 = vpack.c.bf16 %v1637_v31, %v1636_v57 }
0x1695   :  { %2231 = vmatprep.mubr.msk.bf16.mxu0 %vm153_vm0, %v1644_v46 }
0x1696   :  { %v1627_v47 = vpop.permute.xlu0 %1626  ;;  %v1639_v13 = vld [vmem:[#allocation3 + $0x18] sm:$0xff] }
0x1697   :  { %1630 = vst.msk [vmem:[#allocation3 + $0x38] sm:$0xff] %vm153_vm0, %v1627_v47  ;;  %v1645_v14 = vpack.c.bf16 %v1639_v13, %v1638_v45 }
0x1699   :  { %2232 = vmatmul.mubr.msk.bf16.vlgmr.msra.gmra.mrb[32].mxu0 %vm153_vm0, %v1645_v14 }
0x169a   :  { %v1641_v60 = vld [vmem:[#allocation3 + $0x28] sm:$0xff] }
0x169b   :  { %v1646_v50 = vpack.c.bf16 %v1641_v60, %v1640_v9 }
0x169d   :  { %2235 = vmatprep.mubr.msk.bf16.mxu0 %vm153_vm0, %v1646_v50 }
0x169e   :  { %v1643_v53 = vld [vmem:[#allocation3 + $0x38] sm:$0xff] }
0x169f   :  { %v1647_v11 = vpack.c.bf16 %v1643_v53, %v1642_v61 }
0x16a1   :  { %2236 = vmatmul.mubr.msk.bf16.gmra.mrb[36].mxu0 %vm153_vm0, %v1647_v11 }
0x176c   :  { %v2233_v48 = vpop.f32.mrb[32].mxu0 }
0x176d   :  { %v1855_v34 = vadd.f32 %v2233_v48, %v2026_v41  ;;  %v1815_v58 = vpop.f32.mrb[33].mxu0 }
0x176e   :  { %v1853_v39 = vadd.f32 %v2026_v41, %v1815_v58  ;;  %v2234_v21 = vpop.f32.mrb[34].mxu0 }
0x176f   :  { %1865 = vmax.xlane.f32.xlu0 %v1855_v34  ;;  %v1818_v19 = vpop.f32.mrb[35].mxu0  ;;  %v1856_v15 = vadd.f32 %v2234_v21, %v2026_v41 }
0x1770   :  { %v1854_v3 = vadd.f32 %v2026_v41, %v1818_v19  ;;  %1861 = vmax.xlane.f32.xlu1 %v1853_v39 }
0x1773   :  { %1863 = vmax.xlane.f32.xlu0 %v1854_v3 }
0x1774   :  { %1867 = vmax.xlane.f32.xlu1 %v1856_v15  ;;  %v2237_v30 = vpop.f32.mrb[36].mxu0 }
0x1775   :  { %v1831_v56 = vpop.f32.mrb[37].mxu0  ;;  %v1859_v5 = vadd.f32 %v2237_v30, %v2026_v41 }
0x1776   :  { %v1857_v63 = vadd.f32 %v2026_v41, %v1831_v56  ;;  %v2238_v0 = vpop.f32.mrb[38].mxu0 }
0x1777   :  { %v1834_v44 = vpop.f32.mrb[39].mxu0  ;;  %v1860_v16 = vadd.f32 %v2238_v0, %v2026_v41 }
0x1778   :  { %v1858_v18 = vadd.f32 %v2026_v41, %v1834_v44  ;;  %1869 = vmax.xlane.f32.xlu0 %v1857_v63 }
0x177a   :  { %1871 = vmax.xlane.f32.xlu1 %v1858_v18 }
0x177c   :  { %1873 = vmax.xlane.f32.xlu0 %v1859_v5 }
0x177e   :  { %1875 = vmax.xlane.f32.xlu1 %v1860_v16 }
0x17fc   :  { %v1866_v7 = vpop.xlane.xlu0 %1865 }
0x17fd   :  { %v3343_v2 = vsub.f32 %v1855_v34, %v1866_v7  ;;  %v1862_v20 = vpop.xlane.xlu1 %1861 }
0x17fe   :  { %v3345_v26 = vsub.f32 %v1853_v39, %v1862_v20 }
0x17ff   :  { %v1889_v8 = vmul.f32 1.442695, %v3343_v2 }
0x1800   :  { %v1864_v4 = vpop.xlane.xlu0 %1863  ;;  %v1885_v49 = vmul.f32 1.442695, %v3345_v26 }
0x1801   :  { %2412 = vpow2.f32 %v1889_v8  ;;  %v3349_v24 = vsub.f32 %v1854_v3, %v1864_v4  ;;  %v1868_v32 = vpop.xlane.xlu1 %1867 }
0x1802   :  { %v3351_v23 = vsub.f32 %v1856_v15, %v1868_v32  ;;  %2414 = vpow2.f32 %v1885_v49 }
0x1803   :  { %v1887_v38 = vmul.f32 1.442695, %v3349_v24 }
0x1804   :  { %v1891_v33 = vmul.f32 1.442695, %v3351_v23 }
0x1805   :  { %v1870_v51 = vpop.xlane.xlu0 %1869 }
0x1806   :  { %2416 = vpow2.f32 %v1891_v33  ;;  %v3355_v62 = vsub.f32 %v1857_v63, %v1870_v51 }
0x1807   :  { %v1872_v35 = vpop.xlane.xlu1 %1871  ;;  %2418 = vpow2.f32 %v1887_v38 }
0x1808   :  { %v1893_v36 = vmul.f32 1.442695, %v3355_v62  ;;  %v3358_v52 = vsub.f32 %v1858_v18, %v1872_v35 }
0x1809   :  { %v1874_v6 = vpop.xlane.xlu0 %1873 }
0x180a   :  { %2420 = vpow2.f32 %v1893_v36  ;;  %v1895_v12 = vmul.f32 1.442695, %v3358_v52  ;;  %v3361_v40 = vsub.f32 %v1859_v5, %v1874_v6 }
0x180b   :  { %v2413_v29 = vpop.eup %2412  ;;  %v1876_v22 = vpop.xlane.xlu1 %1875 }
0x180c   :  { %v1897_v42 = vmul.f32 1.442695, %v3361_v40  ;;  %v3364_v59 = vsub.f32 %v1860_v16, %v1876_v22  ;;  %1905 = vadd.xlane.f32.xlu0 %v2413_v29  ;;  %2422 = vpow2.f32 %v1895_v12  ;;  %v2415_v43 = vpop.eup %2414 }
0x180e   :  { %2424 = vpow2.f32 %v1897_v42  ;;  %v1899_v25 = vmul.f32 1.442695, %v3364_v59 }
0x1810   :  { %v2417_v1 = vpop.eup %2416  ;;  %1901 = vadd.xlane.f32.xlu0 %v2415_v43  ;;  %2426 = vpow2.f32 %v1899_v25 }
0x1811   :  { %1907 = vadd.xlane.f32.xlu1 %v2417_v1  ;;  %v2419_v17 = vpop.eup %2418 }
0x1814   :  { %v2421_v37 = vpop.eup %2420 }
0x1815   :  { %1909 = vadd.xlane.f32.xlu0 %v2421_v37  ;;  %1903 = vadd.xlane.f32.xlu1 %v2419_v17 }
0x1816   :  { %v2423_v10 = vpop.eup %2422 }
0x1818   :  { %v2425_v27 = vpop.eup %2424 }
0x1819   :  { %1913 = vadd.xlane.f32.xlu0 %v2425_v27  ;;  %1911 = vadd.xlane.f32.xlu1 %v2423_v10 }
0x181a   :  { %v2427_v28 = vpop.eup %2426 }
0x181d   :  { %1915 = vadd.xlane.f32.xlu1 %v2427_v28 }
0x1899   :  { %v1906_v55 = vpop.xlane.xlu0 %1905 }
0x189a   :  { %2428 = vlog2.f32 %v1906_v55 }
0x189d   :  { %v1902_v54 = vpop.xlane.xlu0 %1901 }
0x189e   :  { %2430 = vlog2.f32 %v1902_v54  ;;  %v1908_v57 = vpop.xlane.xlu1 %1907 }
0x189f   :  { %2432 = vlog2.f32 %v1908_v57 }
0x18a2   :  { %v1910_v31 = vpop.xlane.xlu0 %1909  ;;  %v1904_v46 = vpop.xlane.xlu1 %1903 }
0x18a3   :  { %2434 = vlog2.f32 %v1910_v31 }
0x18a4   :  { %v2429_v47 = vpop.eup %2428  ;;  %2436 = vlog2.f32 %v1904_v46 }
0x18a5   :  { %v1922_v45 = vmul.f32 0.6931472, %v2429_v47 }
0x18a6   :  { %v1914_v13 = vpop.xlane.xlu0 %1913  ;;  %v1912_v14 = vpop.xlane.xlu1 %1911 }
0x18a7   :  { %v1935_v9 = vsub.f32 %v3343_v2, %v1922_v45  ;;  %2438 = vlog2.f32 %v1914_v13 }
0x18a8   :  { %v2431_v60 = vpop.eup %2430  ;;  %2440 = vlog2.f32 %v1912_v14 }
0x18a9   :  { %v2433_v50 = vpop.eup %2432  ;;  %1943 = vst [vmem:[#allocation13 + $0x10] sm:$0xff] %v1935_v9  ;;  %v1918_v61 = vmul.f32 0.6931472, %v2431_v60 }
0x18aa   :  { %v1924_v53 = vmul.f32 0.6931472, %v2433_v50  ;;  %v1916_v11 = vpop.xlane.xlu1 %1915 }
0x18ab   :  { %v1933_v41 = vsub.f32 %v3345_v26, %v1918_v61  ;;  %2442 = vlog2.f32 %v1916_v11 }
0x18ac   :  { %v1936_v48 = vsub.f32 %v3351_v23, %v1924_v53 }
0x18ad   :  { %v2435_v34 = vpop.eup %2434  ;;  %1941 = vst [vmem:[#allocation13] sm:$0xff] %v1933_v41 }
0x18ae   :  { %v2437_v58 = vpop.eup %2436  ;;  %1944 = vst [vmem:[#allocation13 + $0x18] sm:$0xff] %v1936_v48  ;;  %v1926_v39 = vmul.f32 0.6931472, %v2435_v34 }
0x18af   :  { %v1920_v21 = vmul.f32 0.6931472, %v2437_v58 }
0x18b0   :  { %v1937_v19 = vsub.f32 %v3355_v62, %v1926_v39 }
0x18b1   :  { %v2439_v3 = vpop.eup %2438  ;;  %v1934_v15 = vsub.f32 %v3349_v24, %v1920_v21 }
0x18b2   :  { %v2441_v30 = vpop.eup %2440  ;;  %1945 = vst [vmem:[#allocation13 + $0x20] sm:$0xff] %v1937_v19  ;;  %v1930_v56 = vmul.f32 0.6931472, %v2439_v3 }
0x18b3   :  { %1942 = vst [vmem:[#allocation13 + $0x8] sm:$0xff] %v1934_v15  ;;  %v1928_v63 = vmul.f32 0.6931472, %v2441_v30 }
0x18b4   :  { %v1939_v0 = vsub.f32 %v3361_v40, %v1930_v56 }
0x18b5   :  { %v2443_v44 = vpop.eup %2442  ;;  %v1938_v18 = vsub.f32 %v3358_v52, %v1928_v63 }
0x18b6   :  { %1947 = vst [vmem:[#allocation13 + $0x30] sm:$0xff] %v1939_v0  ;;  %v1932_v5 = vmul.f32 0.6931472, %v2443_v44 }
0x18b7   :  { %1946 = vst [vmem:[#allocation13 + $0x28] sm:$0xff] %v1938_v18 }
0x18b8   :  { %v1940_v16 = vsub.f32 %v3364_v59, %v1932_v5 }
0x18ba   :  { %1948 = vst [vmem:[#allocation13 + $0x38] sm:$0xff] %v1940_v16 }
0x18bb   :  { %2547 = shalt.err (!%p2544_p8)
}
0x18bc   :  { %s2548_s17 = scalar_lea.hbm %s3399_s9, 1024 }
0x18bd   :  { %p2549_p9 = scmp.ne.s32.totalorder %s3399_s9, %s2548_s17  ;;  %p2552_p10 = scmp.lt.u32.totalorder %s2548_s17, %s3399_s9 }
0x18bf   :  { %p2554_p11 = pnand %p2552_p10, %p2549_p9 }
0x18c1   :  { %2557 = shalt.err (!%p2554_p11)
}
0x18c2   :  { %1960 = dma.vmem_to_hbm [thread:$0]  %s1955_s12, 1024, %s3399_s9, [#allocation7], %s2567_s19, %s2567_s19, %s2568_s20  }
0x18c3   :  { %2564 = dma.done.wait [#allocation7], 1024  }
0x18c4   :  { %2565 = vsyncadd [#allocation7], 4294966272 }
0x18c5   :  { %1964 = vsyncpa [#allocation6], 1 }
0x18c6   :  { %1965 = vsyncpa [#allocation9], 1 }
0x18c7   :  { %1966 = vsyncpa [#allocation12], 1 }
0x18c8   :  { %1967 = vsyncpa [#allocation7], 1 }

</bundles_post_ra>
